<compile_context>
chip_gen: v6e
topology: v6e:2x2x1
jax: 0.10.0
libtpu: 0.0.40
codegen_flags: <defaults>
</compile_context>

<pallas_src>
import jax
import jax.numpy as jnp
from jax.experimental import pallas as pl
from jax.experimental.pallas import tpu as pltpu


# -------------------------------------------------------------------- kernel --
def agcrn_cell_kernel(emb_ref, sup_ref, x_ref, h_ref, wg_ref, wu_ref, o_ref):
    """One batch-block of the AGCRN GRU cell (gate + update adaptive graph convs)."""
    M, Ci = x_ref.shape                      # M = bb * N rows (batch-major)
    Dh = h_ref.shape[1]
    D = emb_ref.shape[1]
    Km1 = sup_ref.shape[0]                   # K - 1 non-identity Chebyshev supports
    K = Km1 + 1
    Cin = Ci + Dh
    KC = K * Cin
    f32, bf16 = jnp.float32, jnp.bfloat16

    E2 = emb_ref[...]                        # (M, D) f32, row b*N+n -> E[n]
    E2_bf = E2.astype(bf16)
    # hoisted per-node broadcast factors, shared by the gate and update feature builds
    Ecols = [jnp.broadcast_to(E2[:, d:d + 1], (M, KC)) for d in range(D)]

    X2 = x_ref[...].astype(f32)              # (M, Ci)
    H2 = h_ref[...]                          # (M, Dh) f32

    # ---- adaptive graph propagation: ONE (M,M)@(M,Cin) matmul per Chebyshev order ----------
    G2 = jnp.concatenate([X2, H2], axis=1)   # (M, Cin) = [x | h]
    G2_bf = G2.astype(bf16)
    pG = [G2]                                # k = 0 : identity support
    for k in range(Km1):
        pG.append(jnp.dot(sup_ref[k], G2_bf, preferred_element_type=f32))

    def feature(act):                        # (M, K*Cin) f32 -> (M, D*K*Cin + D) bf16
        cols = [(Ecols[d] * act).astype(bf16) for d in range(D)]
        cols.append(E2_bf)                   # bias columns: contribute E @ bias_pool
        return jnp.concatenate(cols, axis=1)

    # ---- gate path: z | r fused into one wide matmul, biases folded into the weights -------
    act_g = jnp.concatenate(pG, axis=1)      # (M, K*Cin)
    yg = jnp.dot(feature(act_g), wg_ref[...], preferred_element_type=f32)    # (M, 2*Dh)
    z = jax.nn.sigmoid(yg[:, :Dh])
    r = jax.nn.sigmoid(yg[:, Dh:])

    # ---- candidate path: input is [x, z*h]; the propagated x slices are reused -------------
    ZH = z * H2                              # (M, Dh) f32
    ZH_bf = ZH.astype(bf16)
    pU = [jnp.concatenate([X2, ZH], axis=1)]
    for k in range(Km1):
        pzh = jnp.dot(sup_ref[k], ZH_bf, preferred_element_type=f32)         # (M, Dh)
        pU.append(jnp.concatenate([pG[k + 1][:, :Ci], pzh], axis=1))
    act_u = jnp.concatenate(pU, axis=1)      # (M, K*Cin)
    yu = jnp.dot(feature(act_u), wu_ref[...], preferred_element_type=f32)    # (M, Dh)
    hc = jnp.tanh(yu)

    # ---- GRU combine (f32), store at native Dh width (no padded writeback) -----------------
    o_ref[...] = r * H2 + (1.0 - r) * hc


# ------------------------------------------------------------------- helpers --
def _tpu_generation_info():
    """(num TensorCores per device, per-core VMEM working budget in bytes)."""
    kind = ""
    try:
        kind = jax.devices()[0].device_kind.lower()
    except Exception:
        pass
    if "7" in kind:                              # v7x: 2 TCs, 64 MiB VMEM per core
        return 2, 64 * 2 ** 20
    if "v5p" in kind or "v4" in kind:            # megacore generations
        return 2, 128 * 2 ** 20
    return 1, 128 * 2 ** 20                      # v5e / v6e: 1 TC, 128 MiB


def _vmem_estimate(bb, N, Ci, Dh, D, K):
    """Rough per-grid-step VMEM footprint (bytes) used to size the batch block."""
    M = bb * N
    Cin = Ci + Dh
    KC = K * Cin
    Dtot = D * KC + D
    sup = (K - 1) * M * M * 2                    # block-diagonal supports (bf16)
    wts = Dtot * 3 * Dh * 2 + M * D * 4          # packed weights + replicated embeddings
    io = 2 * (M * Ci * 2 + 2 * M * Dh * 4)       # double-buffered x / h / out blocks
    acts = 2 * M * KC * 4 + M * Dtot * 2 + 8 * M * Dh * 4 + D * M * KC * 4
    return sup + wts + io + acts


# ------------------------------------------------------------------- wrapper --
def agcrn_cell_forward(x, state, node_embed, params, cheb_k, *, batch_block=None):
    assert cheb_k >= 2
    B, N, Ci = x.shape
    Dh = state.shape[-1]
    D = node_embed.shape[-1]
    K = cheb_k
    Cin = Ci + Dh
    Dtot = D * K * Cin + D
    f32, bf16 = jnp.float32, jnp.bfloat16

    num_tc, vmem_budget = _tpu_generation_info()

    # ---- batch block: TC-count aware default, shrunk until the VMEM estimate fits ----------
    if batch_block is None:
        g0 = num_tc if (num_tc <= B and B % num_tc == 0) else 1
        G = B
        for cand in range(g0, B + 1):
            if B % cand:
                continue
            if _vmem_estimate(B // cand, N, Ci, Dh, D, K) <= 0.5 * vmem_budget:
                G = cand
                break
        bb = B // G
    else:
        bb = batch_block
        assert B % bb == 0, "batch_block must divide batch"
        G = B // bb
    M = bb * N
    est = _vmem_estimate(bb, N, Ci, Dh, D, K)
    vmem_limit = int(min(vmem_budget, max(32 * 2 ** 20, 2 * est)))

    E = node_embed.astype(f32)

    # ---- Chebyshev supports: batch-independent -> computed once here (exact f32 softmax) ---
    A = jax.nn.softmax(jax.nn.relu(E @ E.T), axis=1)
    sups = [A]
    if K > 2:
        prev2, prev1 = jnp.eye(N, dtype=f32), A
        for _ in range(2, K):
            cur = 2.0 * A @ prev1 - prev2
            sups.append(cur)
            prev2, prev1 = prev1, cur
    # block-diagonal expansion folds the whole batch block into one matmul per support
    eye_bb = jnp.eye(bb, dtype=f32)
    sup_bd = jnp.stack([jnp.kron(eye_bb, s) for s in sups], axis=0).astype(bf16)   # (K-1, M, M)

    # ---- fused weight packing: rows (d, k, c) + D bias rows; columns z|r (gate) / u ---------
    def pack(wpool, bpool):
        w = wpool.reshape(D * K * Cin, wpool.shape[-1])
        return jnp.concatenate([w, bpool], axis=0).astype(bf16)

    wg = pack(params["wg"], params["bg"])        # (Dtot, 2*Dh)
    wu = pack(params["wu"], params["bu"])        # (Dtot, Dh)

    emb_rep = jnp.tile(E, (bb, 1))               # (M, D): row b*N+n -> E[n]
    x2 = x.reshape(B * N, Ci).astype(bf16)       # x fed in bf16 (MXU / feature operand)
    h2 = state.reshape(B * N, Dh).astype(f32)    # state read unpadded in f32

    out2 = pl.pallas_call(
        agcrn_cell_kernel,
        out_shape=jax.ShapeDtypeStruct((B * N, Dh), f32),
        grid=(G,),
        in_specs=[
            pl.BlockSpec((M, D), lambda g: (0, 0)),              # replicated node embeddings
            pl.BlockSpec((K - 1, M, M), lambda g: (0, 0, 0)),    # block-diag supports
            pl.BlockSpec((M, Ci), lambda g: (g, 0)),             # x batch block
            pl.BlockSpec((M, Dh), lambda g: (g, 0)),             # hidden state batch block
            pl.BlockSpec((Dtot, 2 * Dh), lambda g: (0, 0)),      # fused gate weights (+bias)
            pl.BlockSpec((Dtot, Dh), lambda g: (0, 0)),          # fused update weights (+bias)
        ],
        out_specs=pl.BlockSpec((M, Dh), lambda g: (g, 0)),
        compiler_params=pltpu.CompilerParams(
            dimension_semantics=("parallel",),
            vmem_limit_bytes=vmem_limit),
    )(emb_rep, sup_bd, x2, h2, wg, wu)
    return out2.reshape(B, N, Dh)


# ------------------------------------------------------------- pure-JAX ref --
def _avwgcn_ref(x, E, Wpool, Bpool, cheb_k):
    N = E.shape[0]
    A = jax.nn.softmax(jax.nn.relu(E @ E.T), axis=1)
    sup = [jnp.eye(N, dtype=jnp.float32), A]
    for _ in range(2, cheb_k):
        sup.append(2.0 * A @ sup[-1] - sup[-2])
    S = jnp.stack(sup, axis=0)
    W = jnp.einsum("nd,dkio->nkio", E, Wpool)
    b = E @ Bpool
    xg = jnp.einsum("knm,bmc->bknc", S, x)
    xg = jnp.transpose(xg, (0, 2, 1, 3))
    return jnp.einsum("bnki,nkio->bno", xg, W) + b


def agcrn_cell_ref(x, state, E, params, cheb_k, hidden_dim):
    inp = jnp.concatenate([x, state], axis=-1)
    zr = jax.nn.sigmoid(_avwgcn_ref(inp, E, params["wg"], params["bg"], cheb_k))
    z, r = zr[..., :hidden_dim], zr[..., hidden_dim:]
    cand = jnp.concatenate([x, z * state], axis=-1)
    hc = jnp.tanh(_avwgcn_ref(cand, E, params["wu"], params["bu"], cheb_k))
    return r * state + (1.0 - r) * hc


# ---------------------------------------------------------------------- main --
if __name__ == "__main__":
    B, N, Ci, Dh, cheb_k, D = 2, 16, 4, 32, 3, 8
    Cin = Ci + Dh

    key = jax.random.PRNGKey(0)
    ks = jax.random.split(key, 7)
    x = jax.random.normal(ks[0], (B, N, Ci), jnp.float32) * 0.5
    state = jax.random.normal(ks[1], (B, N, Dh), jnp.float32) * 0.5
    node_embed = jax.random.normal(ks[2], (N, D), jnp.float32)

    # deterministic synthetic parameters (PyTorch __init__ leaves them uninitialized)
    params = {
        "wg": jax.random.normal(ks[3], (D, cheb_k, Cin, 2 * Dh), jnp.float32) * 0.1,
        "bg": jax.random.normal(ks[4], (D, 2 * Dh), jnp.float32) * 0.1,
        "wu": jax.random.normal(ks[5], (D, cheb_k, Cin, Dh), jnp.float32) * 0.1,
        "bu": jax.random.normal(ks[6], (D, Dh), jnp.float32) * 0.1,
    }

    h = agcrn_cell_forward(x, state, node_embed, params, cheb_k)
    h = jax.block_until_ready(h)

    h_ref = agcrn_cell_ref(x, state, node_embed, params, cheb_k, Dh)
    assert h.shape == (B, N, Dh) and h.dtype == jnp.float32
    # tolerance accounts for bf16 MXU operands (f32 accumulation)
    assert jnp.allclose(h, h_ref, atol=3e-2, rtol=3e-2), "mismatch vs reference"

    print("KERNEL_OK")
</pallas_src>

<mosaic_0001>
module attributes {stable_mosaic.version = 11 : i64} {
  func.func @agcrn_cell_kernel(%arg0: i32, %arg1: memref<32x8xf32, #tpu.memory_space<vmem>>, %arg2: memref<2x32x32xbf16, #tpu.memory_space<vmem>>, %arg3: memref<32x4xbf16, #tpu.memory_space<vmem>>, %arg4: memref<32x32xf32, #tpu.memory_space<vmem>>, %arg5: memref<872x64xbf16, #tpu.memory_space<vmem>>, %arg6: memref<872x32xbf16, #tpu.memory_space<vmem>>, %arg7: memref<32x32xf32, #tpu.memory_space<vmem>>) attributes {dimension_semantics = [#tpu.dimension_semantics<parallel>], iteration_bounds = array<i64: 1>, scalar_prefetch = 0 : i64, scratch_operands = 0 : i64, tpu.core_type = #tpu.core_type<tc>, window_params = [{pipeline_mode = #tpu.pipeline_mode<synchronous>, transform_indices = @transform_0, window_bounds = array<i64: 32, 8>}, {pipeline_mode = #tpu.pipeline_mode<synchronous>, transform_indices = @transform_1, window_bounds = array<i64: 2, 32, 32>}, {transform_indices = @transform_2, window_bounds = array<i64: 32, 4>}, {transform_indices = @transform_3, window_bounds = array<i64: 32, 32>}, {pipeline_mode = #tpu.pipeline_mode<synchronous>, transform_indices = @transform_4, window_bounds = array<i64: 872, 64>}, {pipeline_mode = #tpu.pipeline_mode<synchronous>, transform_indices = @transform_5, window_bounds = array<i64: 872, 32>}, {transform_indices = @transform_6, window_bounds = array<i64: 32, 32>}]} {
    %c0 = arith.constant 0 : index
    %c0_0 = arith.constant 0 : index
    %0 = vector.load %arg1[%c0, %c0_0] : memref<32x8xf32, #tpu.memory_space<vmem>>, vector<32x8xf32>
    %1 = arith.truncf %0 : vector<32x8xf32> to vector<32x8xbf16>
    %2 = vector.extract_strided_slice %0 {offsets = [0, 0], sizes = [32, 1], strides = [1, 1]} : vector<32x8xf32> to vector<32x1xf32>
    %3 = vector.shape_cast %2 : vector<32x1xf32> to vector<32x1xf32>
    %4 = vector.broadcast %3 : vector<32x1xf32> to vector<32x108xf32>
    %5 = vector.extract_strided_slice %0 {offsets = [0, 1], sizes = [32, 1], strides = [1, 1]} : vector<32x8xf32> to vector<32x1xf32>
    %6 = vector.shape_cast %5 : vector<32x1xf32> to vector<32x1xf32>
    %7 = vector.broadcast %6 : vector<32x1xf32> to vector<32x108xf32>
    %8 = vector.extract_strided_slice %0 {offsets = [0, 2], sizes = [32, 1], strides = [1, 1]} : vector<32x8xf32> to vector<32x1xf32>
    %9 = vector.shape_cast %8 : vector<32x1xf32> to vector<32x1xf32>
    %10 = vector.broadcast %9 : vector<32x1xf32> to vector<32x108xf32>
    %11 = vector.extract_strided_slice %0 {offsets = [0, 3], sizes = [32, 1], strides = [1, 1]} : vector<32x8xf32> to vector<32x1xf32>
    %12 = vector.shape_cast %11 : vector<32x1xf32> to vector<32x1xf32>
    %13 = vector.broadcast %12 : vector<32x1xf32> to vector<32x108xf32>
    %14 = vector.extract_strided_slice %0 {offsets = [0, 4], sizes = [32, 1], strides = [1, 1]} : vector<32x8xf32> to vector<32x1xf32>
    %15 = vector.shape_cast %14 : vector<32x1xf32> to vector<32x1xf32>
    %16 = vector.broadcast %15 : vector<32x1xf32> to vector<32x108xf32>
    %17 = vector.extract_strided_slice %0 {offsets = [0, 5], sizes = [32, 1], strides = [1, 1]} : vector<32x8xf32> to vector<32x1xf32>
    %18 = vector.shape_cast %17 : vector<32x1xf32> to vector<32x1xf32>
    %19 = vector.broadcast %18 : vector<32x1xf32> to vector<32x108xf32>
    %20 = vector.extract_strided_slice %0 {offsets = [0, 6], sizes = [32, 1], strides = [1, 1]} : vector<32x8xf32> to vector<32x1xf32>
    %21 = vector.shape_cast %20 : vector<32x1xf32> to vector<32x1xf32>
    %22 = vector.broadcast %21 : vector<32x1xf32> to vector<32x108xf32>
    %23 = vector.extract_strided_slice %0 {offsets = [0, 7], sizes = [32, 1], strides = [1, 1]} : vector<32x8xf32> to vector<32x1xf32>
    %24 = vector.shape_cast %23 : vector<32x1xf32> to vector<32x1xf32>
    %25 = vector.broadcast %24 : vector<32x1xf32> to vector<32x108xf32>
    %c0_1 = arith.constant 0 : index
    %c0_2 = arith.constant 0 : index
    %26 = vector.load %arg3[%c0_1, %c0_2] : memref<32x4xbf16, #tpu.memory_space<vmem>>, vector<32x4xbf16>
    %27 = arith.extf %26 : vector<32x4xbf16> to vector<32x4xf32>
    %c0_3 = arith.constant 0 : index
    %c0_4 = arith.constant 0 : index
    %28 = vector.load %arg4[%c0_3, %c0_4] : memref<32x32xf32, #tpu.memory_space<vmem>>, vector<32x32xf32>
    %29 = tpu.concatenate %27, %28 in 1 : vector<32x4xf32>, vector<32x32xf32> -> vector<32x36xf32>
    %30 = arith.truncf %29 : vector<32x36xf32> to vector<32x36xbf16>
    %c0_5 = arith.constant 0 : index
    %c0_6 = arith.constant 0 : index
    %c0_7 = arith.constant 0 : index
    %31 = vector.load %arg2[%c0_5, %c0_6, %c0_7] : memref<2x32x32xbf16, #tpu.memory_space<vmem>>, vector<1x32x32xbf16>
    %32 = vector.shape_cast %31 : vector<1x32x32xbf16> to vector<32x32xbf16>
    %cst = arith.constant dense<0.000000e+00> : vector<32x36xf32>
    %33 = tpu.matmul %32, %30, %cst {dimension_numbers = #tpu.dot_dimension_numbers<[1], [0], [0], [1], [0, 0, 1, 1], [], []>} : vector<32x32xbf16>, vector<32x36xbf16>, vector<32x36xf32> -> vector<32x36xf32>
    %c1 = arith.constant 1 : index
    %c0_8 = arith.constant 0 : index
    %c0_9 = arith.constant 0 : index
    %34 = vector.load %arg2[%c1, %c0_8, %c0_9] : memref<2x32x32xbf16, #tpu.memory_space<vmem>>, vector<1x32x32xbf16>
    %35 = vector.shape_cast %34 : vector<1x32x32xbf16> to vector<32x32xbf16>
    %cst_10 = arith.constant dense<0.000000e+00> : vector<32x36xf32>
    %36 = tpu.matmul %35, %30, %cst_10 {dimension_numbers = #tpu.dot_dimension_numbers<[1], [0], [0], [1], [0, 0, 1, 1], [], []>} : vector<32x32xbf16>, vector<32x36xbf16>, vector<32x36xf32> -> vector<32x36xf32>
    %37 = tpu.concatenate %29, %33, %36 in 1 : vector<32x36xf32>, vector<32x36xf32>, vector<32x36xf32> -> vector<32x108xf32>
    %38 = arith.mulf %4, %37 : vector<32x108xf32>
    %39 = arith.truncf %38 : vector<32x108xf32> to vector<32x108xbf16>
    %40 = arith.mulf %7, %37 : vector<32x108xf32>
    %41 = arith.truncf %40 : vector<32x108xf32> to vector<32x108xbf16>
    %42 = arith.mulf %10, %37 : vector<32x108xf32>
    %43 = arith.truncf %42 : vector<32x108xf32> to vector<32x108xbf16>
    %44 = arith.mulf %13, %37 : vector<32x108xf32>
    %45 = arith.truncf %44 : vector<32x108xf32> to vector<32x108xbf16>
    %46 = arith.mulf %16, %37 : vector<32x108xf32>
    %47 = arith.truncf %46 : vector<32x108xf32> to vector<32x108xbf16>
    %48 = arith.mulf %19, %37 : vector<32x108xf32>
    %49 = arith.truncf %48 : vector<32x108xf32> to vector<32x108xbf16>
    %50 = arith.mulf %22, %37 : vector<32x108xf32>
    %51 = arith.truncf %50 : vector<32x108xf32> to vector<32x108xbf16>
    %52 = arith.mulf %25, %37 : vector<32x108xf32>
    %53 = arith.truncf %52 : vector<32x108xf32> to vector<32x108xbf16>
    %54 = tpu.concatenate %39, %41, %43, %45, %47, %49, %51, %53, %1 in 1 : vector<32x108xbf16>, vector<32x108xbf16>, vector<32x108xbf16>, vector<32x108xbf16>, vector<32x108xbf16>, vector<32x108xbf16>, vector<32x108xbf16>, vector<32x108xbf16>, vector<32x8xbf16> -> vector<32x872xbf16>
    %c0_11 = arith.constant 0 : index
    %c0_12 = arith.constant 0 : index
    %55 = vector.load %arg5[%c0_11, %c0_12] : memref<872x64xbf16, #tpu.memory_space<vmem>>, vector<872x64xbf16>
    %cst_13 = arith.constant dense<0.000000e+00> : vector<32x64xf32>
    %56 = tpu.matmul %54, %55, %cst_13 {dimension_numbers = #tpu.dot_dimension_numbers<[1], [0], [0], [1], [0, 0, 1, 1], [], []>} : vector<32x872xbf16>, vector<872x64xbf16>, vector<32x64xf32> -> vector<32x64xf32>
    %57 = vector.extract_strided_slice %56 {offsets = [0, 0], sizes = [32, 32], strides = [1, 1]} : vector<32x64xf32> to vector<32x32xf32>
    %58 = arith.negf %57 : vector<32x32xf32>
    %59 = math.exp %58 : vector<32x32xf32>
    %cst_14 = arith.constant 1.000000e+00 : f32
    %60 = vector.broadcast %cst_14 : f32 to vector<32x32xf32>
    %61 = arith.addf %60, %59 : vector<32x32xf32>
    %62 = arith.divf %60, %61 : vector<32x32xf32>
    %63 = vector.extract_strided_slice %56 {offsets = [0, 32], sizes = [32, 32], strides = [1, 1]} : vector<32x64xf32> to vector<32x32xf32>
    %64 = arith.negf %63 : vector<32x32xf32>
    %65 = math.exp %64 : vector<32x32xf32>
    %cst_15 = arith.constant 1.000000e+00 : f32
    %66 = vector.broadcast %cst_15 : f32 to vector<32x32xf32>
    %67 = arith.addf %66, %65 : vector<32x32xf32>
    %68 = arith.divf %66, %67 : vector<32x32xf32>
    %69 = arith.mulf %62, %28 : vector<32x32xf32>
    %70 = arith.truncf %69 : vector<32x32xf32> to vector<32x32xbf16>
    %71 = tpu.concatenate %27, %69 in 1 : vector<32x4xf32>, vector<32x32xf32> -> vector<32x36xf32>
    %c0_16 = arith.constant 0 : index
    %c0_17 = arith.constant 0 : index
    %c0_18 = arith.constant 0 : index
    %72 = vector.load %arg2[%c0_16, %c0_17, %c0_18] : memref<2x32x32xbf16, #tpu.memory_space<vmem>>, vector<1x32x32xbf16>
    %73 = vector.shape_cast %72 : vector<1x32x32xbf16> to vector<32x32xbf16>
    %cst_19 = arith.constant dense<0.000000e+00> : vector<32x32xf32>
    %74 = tpu.matmul %73, %70, %cst_19 {dimension_numbers = #tpu.dot_dimension_numbers<[1], [0], [0], [1], [0, 0, 1, 1], [], []>} : vector<32x32xbf16>, vector<32x32xbf16>, vector<32x32xf32> -> vector<32x32xf32>
    %75 = vector.extract_strided_slice %33 {offsets = [0, 0], sizes = [32, 4], strides = [1, 1]} : vector<32x36xf32> to vector<32x4xf32>
    %76 = tpu.concatenate %75, %74 in 1 : vector<32x4xf32>, vector<32x32xf32> -> vector<32x36xf32>
    %c1_20 = arith.constant 1 : index
    %c0_21 = arith.constant 0 : index
    %c0_22 = arith.constant 0 : index
    %77 = vector.load %arg2[%c1_20, %c0_21, %c0_22] : memref<2x32x32xbf16, #tpu.memory_space<vmem>>, vector<1x32x32xbf16>
    %78 = vector.shape_cast %77 : vector<1x32x32xbf16> to vector<32x32xbf16>
    %cst_23 = arith.constant dense<0.000000e+00> : vector<32x32xf32>
    %79 = tpu.matmul %78, %70, %cst_23 {dimension_numbers = #tpu.dot_dimension_numbers<[1], [0], [0], [1], [0, 0, 1, 1], [], []>} : vector<32x32xbf16>, vector<32x32xbf16>, vector<32x32xf32> -> vector<32x32xf32>
    %80 = vector.extract_strided_slice %36 {offsets = [0, 0], sizes = [32, 4], strides = [1, 1]} : vector<32x36xf32> to vector<32x4xf32>
    %81 = tpu.concatenate %80, %79 in 1 : vector<32x4xf32>, vector<32x32xf32> -> vector<32x36xf32>
    %82 = tpu.concatenate %71, %76, %81 in 1 : vector<32x36xf32>, vector<32x36xf32>, vector<32x36xf32> -> vector<32x108xf32>
    %83 = arith.mulf %4, %82 : vector<32x108xf32>
    %84 = arith.truncf %83 : vector<32x108xf32> to vector<32x108xbf16>
    %85 = arith.mulf %7, %82 : vector<32x108xf32>
    %86 = arith.truncf %85 : vector<32x108xf32> to vector<32x108xbf16>
    %87 = arith.mulf %10, %82 : vector<32x108xf32>
    %88 = arith.truncf %87 : vector<32x108xf32> to vector<32x108xbf16>
    %89 = arith.mulf %13, %82 : vector<32x108xf32>
    %90 = arith.truncf %89 : vector<32x108xf32> to vector<32x108xbf16>
    %91 = arith.mulf %16, %82 : vector<32x108xf32>
    %92 = arith.truncf %91 : vector<32x108xf32> to vector<32x108xbf16>
    %93 = arith.mulf %19, %82 : vector<32x108xf32>
    %94 = arith.truncf %93 : vector<32x108xf32> to vector<32x108xbf16>
    %95 = arith.mulf %22, %82 : vector<32x108xf32>
    %96 = arith.truncf %95 : vector<32x108xf32> to vector<32x108xbf16>
    %97 = arith.mulf %25, %82 : vector<32x108xf32>
    %98 = arith.truncf %97 : vector<32x108xf32> to vector<32x108xbf16>
    %99 = tpu.concatenate %84, %86, %88, %90, %92, %94, %96, %98, %1 in 1 : vector<32x108xbf16>, vector<32x108xbf16>, vector<32x108xbf16>, vector<32x108xbf16>, vector<32x108xbf16>, vector<32x108xbf16>, vector<32x108xbf16>, vector<32x108xbf16>, vector<32x8xbf16> -> vector<32x872xbf16>
    %c0_24 = arith.constant 0 : index
    %c0_25 = arith.constant 0 : index
    %100 = vector.load %arg6[%c0_24, %c0_25] : memref<872x32xbf16, #tpu.memory_space<vmem>>, vector<872x32xbf16>
    %cst_26 = arith.constant dense<0.000000e+00> : vector<32x32xf32>
    %101 = tpu.matmul %99, %100, %cst_26 {dimension_numbers = #tpu.dot_dimension_numbers<[1], [0], [0], [1], [0, 0, 1, 1], [], []>} : vector<32x872xbf16>, vector<872x32xbf16>, vector<32x32xf32> -> vector<32x32xf32>
    %102 = math.tanh %101 : vector<32x32xf32>
    %103 = arith.mulf %68, %28 : vector<32x32xf32>
    %cst_27 = arith.constant 1.000000e+00 : f32
    %104 = vector.broadcast %cst_27 : f32 to vector<32x32xf32>
    %105 = arith.subf %104, %68 : vector<32x32xf32>
    %106 = arith.mulf %105, %102 : vector<32x32xf32>
    %107 = arith.addf %103, %106 : vector<32x32xf32>
    %c0_28 = arith.constant 0 : index
    %c0_29 = arith.constant 0 : index
    %108 = vector.load %arg7[%c0_28, %c0_29] : memref<32x32xf32, #tpu.memory_space<vmem>>, vector<32x32xf32>
    tpu.vector_store %arg7[%c0_28, %c0_29], %107 {strides = array<i32>} : memref<32x32xf32, #tpu.memory_space<vmem>>, vector<32x32xf32>,
    return
  }
  func.func @transform_0(%arg0: i32) -> (i32, i32) {
    %c0_i32 = arith.constant 0 : i32
    %c0_i32_0 = arith.constant 0 : i32
    %c0_i32_1 = arith.constant 0 : i32
    return %c0_i32, %c0_i32_0 : i32, i32
  }
  func.func @transform_1(%arg0: i32) -> (i32, i32, i32) {
    %c0_i32 = arith.constant 0 : i32
    %c0_i32_0 = arith.constant 0 : i32
    %c0_i32_1 = arith.constant 0 : i32
    %c0_i32_2 = arith.constant 0 : i32
    return %c0_i32, %c0_i32_0, %c0_i32_1 : i32, i32, i32
  }
  func.func @transform_2(%arg0: i32) -> (i32, i32) {
    %c0_i32 = arith.constant 0 : i32
    %c0_i32_0 = arith.constant 0 : i32
    return %arg0, %c0_i32 : i32, i32
  }
  func.func @transform_3(%arg0: i32) -> (i32, i32) {
    %c0_i32 = arith.constant 0 : i32
    %c0_i32_0 = arith.constant 0 : i32
    return %arg0, %c0_i32 : i32, i32
  }
  func.func @transform_4(%arg0: i32) -> (i32, i32) {
    %c0_i32 = arith.constant 0 : i32
    %c0_i32_0 = arith.constant 0 : i32
    %c0_i32_1 = arith.constant 0 : i32
    return %c0_i32, %c0_i32_0 : i32, i32
  }
  func.func @transform_5(%arg0: i32) -> (i32, i32) {
    %c0_i32 = arith.constant 0 : i32
    %c0_i32_0 = arith.constant 0 : i32
    %c0_i32_1 = arith.constant 0 : i32
    return %c0_i32, %c0_i32_0 : i32, i32
  }
  func.func @transform_6(%arg0: i32) -> (i32, i32) {
    %c0_i32 = arith.constant 0 : i32
    %c0_i32_0 = arith.constant 0 : i32
    return %arg0, %c0_i32 : i32, i32
  }
}

</mosaic_0001>

<bundles_post_ra>
// kernel: tpu_custom_call.1
= control target key start
LH: loop header
LB: loop body
LE: loop exit
PB: predicated region body
PF: predicated region fallthrough
CT: control target
= control target key end

     0   :  { %s2883_s25 = smov 4   ;;  %vm212_vm0 = vcmask 261120   ;;  %v2884_v6 = vmov 1   ;;  %v2885_v9 = vmov 2   ;;  %v2886_v10 = vmov 4   ;;  %s3874_s0 = inlined_call_operand.vmem [shape: f32[32,8], index: 0, kind: input, shape index: {}]   ;;  %s3875_s1 = inlined_call_operand.vmem [shape: bf16[2,32,32], index: 1, kind: input, shape index: {}]   ;;  %s3876_s2 = inlined_call_operand.vmem [shape: bf16[32,4], index: 2, kind: input, shape index: {}]   ;;  %s3877_s3 = inlined_call_operand.vmem [shape: f32[32,32], index: 3, kind: input, shape index: {}]   ;;  %s3878_s4 = inlined_call_operand.vmem [shape: bf16[872,64], index: 4, kind: input, shape index: {}]   ;;  %s3879_s5 = inlined_call_operand.vmem [shape: bf16[872,32], index: 5, kind: input, shape index: {}]   ;;  %s3880_s6 = inlined_call_operand.hbm [shape: f32[32,32], index: 6, kind: output, shape index: {}]  }
   0x1   :  { %v173_v0 = vld [vmem:[%s3877_s3 + $0x10] sm:$0xff]  ;;  %v171_v1 = vld [vmem:[%s3877_s3] sm:$0xff]  ;;  %v174_v2 = vld [vmem:[%s3877_s3 + $0x18] sm:$0xff]  ;;  %2694 = vset.pattern.permute.xlu1 %v2884_v6  ;;  %2693 = vset.pattern.permute.xlu0 %v2884_v6  ;;  %v2887_v11 = vmov 3   ;;  %v2888_v14 = vmov 5   ;;  %v2889_v15 = vmov 6  }
   0x2   :  { %183 = vrot.lane.b32.xlu0 %v173_v0, %s2883_s25  ;;  %179 = vrot.lane.b32.xlu1 %v171_v1, %s2883_s25  ;;  %v172_v3 = vld [vmem:[%s3877_s3 + $0x8] sm:$0xff]  ;;  %v2717_v4 = vld [vmem:[%s3875_s1] sm:$0xff]  }
   0x3   :  { %v2718_v5 = vld [vmem:[%s3875_s1 + $0x10] sm:$0xff]   ;;  %2605 = vmatprep.mubr.msk.bf16.mxu0 %vm212_vm0, %v2717_v4  ;;  %v2967_v7 = vld [vmem:[%s3874_s0 + $0x8] sm:$0xff]  ;;  %v2972_v8 = vld [vmem:[%s3874_s0] sm:$0xff] }
   0x4   :  { %2613 = vmatprep.mubr.msk.bf16.mxu1 %vm212_vm0, %v2718_v5  ;;  %v2985_v12 = vld [vmem:[%s3874_s0 + $0x10] sm:$0xff]  ;;  %v2993_v13 = vld [vmem:[%s3874_s0 + $0x18] sm:$0xff] }
   0x6   :  { %185 = vrot.lane.b32.xlu0 %v174_v2, %s2883_s25  ;;  %181 = vrot.lane.b32.xlu1 %v172_v3, %s2883_s25 }
   0xa   :  { %56 = vperm.xlu1 %2694, %v2967_v7   ;;  %52 = vperm.xlu0 %2693, %v2972_v8  }
   0xe   :  { %2695 = vset.pattern.permute.xlu1 %v2885_v9  ;;  %2698 = vset.pattern.permute.xlu0 %v2886_v10 }
   0xf   :  { %68 = vperm.xlu1 %2695, %v2972_v8   ;;  %104 = vperm.xlu0 %2698, %v2967_v7  }
  0x13   :  { %2696 = vset.pattern.permute.xlu1 %v2887_v11  ;;  %2699 = vset.pattern.permute.xlu0 %v2885_v9 }
  0x14   :  { %88 = vperm.xlu1 %2696, %v2967_v7   ;;  %72 = vperm.xlu0 %2699, %v2967_v7  }
  0x18   :  { %2697 = vset.pattern.permute.xlu1 %v2886_v10  ;;  %76 = vperm.xlu0 %2699, %v2985_v12  }
  0x19   :  { %100 = vperm.xlu1 %2697, %v2972_v8  }
  0x1d   :  { %2700 = vset.pattern.permute.xlu1 %v2884_v6 }
  0x1e   :  { %60 = vperm.xlu1 %2700, %v2985_v12  }
  0x22   :  { %64 = vperm.xlu1 %2700, %v2993_v13  }
  0x26   :  { %2701 = vset.pattern.permute.xlu1 %v2885_v9 }
  0x27   :  { %80 = vperm.xlu1 %2701, %v2993_v13  }
  0x2b   :  { %2702 = vset.pattern.permute.xlu1 %v2888_v14 }
  0x2c   :  { %116 = vperm.xlu1 %2702, %v2972_v8  }
  0x30   :  { %2703 = vset.pattern.permute.xlu1 %v2889_v15 }
  0x31   :  { %132 = vperm.xlu1 %2703, %v2972_v8  }
  0x32   :  { %11 = vsyncpa [#allocation3], 0  ;;  %v3005_v16 = vld [vmem:[%s3876_s2 + $0x8] sm:$0xff]   ;;  %v3010_v17 = vld [vmem:[%s3876_s2] sm:$0xff]   ;;  %vm191_vm1 = vcmask 31744   ;;  %v2890_v34 = vmov 7  }
  0x33   :  { %v3882_v20 = vunpack.c.l.bf16 %v3005_v16  ;;  %v3884_v21 = vunpack.c.l.bf16 %v3010_v17  ;;  %v3881_v22 = vunpack.c.h.bf16 %v3005_v16  ;;  %v3883_v23 = vunpack.c.h.bf16 %v3010_v17  ;;  %v3043_v32 = vld [vmem:[%s3875_s1 + $0x8] sm:$0xff]   ;;  %v3048_v33 = vld [vmem:[%s3875_s1 + $0x18] sm:$0xff]   ;;  %2704 = vset.pattern.permute.xlu0 %v2890_v34  ;;  %s2891_s24 = smov 36   ;;  %s2892_s26 = smov 72   ;;  %v2723_v47 = vld [vmem:[%s3878_s4 + $0x70] sm:$0xff]  }
  0x34   :  { %v2893_v43 = vmov 0   ;;  %v2721_v45 = vld [vmem:[%s3878_s4 + $0x78] sm:$0xff]   ;;  %v2724_v48 = vld [vmem:[%s3878_s4 + $0x30] sm:$0xff]   ;;  %v2725_v52 = vld [vmem:[%s3878_s4 + $0x68] sm:$0xff]   ;;  %vm370_vm2 = vcmask 293888   ;;  %vm375_vm3 = vcmask 588800  }
  0x35   :  { %v2722_v46 = vld [vmem:[%s3878_s4 + $0x38] sm:$0xff]   ;;  %v2735_v53 = vld [vmem:[%s3878_s4 + $0xf0] sm:$0xff]   ;;  %v2726_v55 = vld [vmem:[%s3878_s4 + $0x28] sm:$0xff]   ;;  %s2894_s18 = smov 88   ;;  %s2895_s19 = smov 108   ;;  %vm971_vm4 = vcmask 1043456  }
  0x36   :  { %v2731_v49 = vld [vmem:[%s3878_s4 + $0xf8] sm:$0xff]   ;;  %v2736_v54 = vld [vmem:[%s3878_s4 + $0xb0] sm:$0xff]   ;;  %v2739_v56 = vld [vmem:[%s3878_s4 + $0xe8] sm:$0xff]   ;;  %s2896_s23 = smov 48   ;;  %s2897_s27 = smov 68   ;;  %vm476_vm5 = vcmask 883712  }
  0x37   :  { %v2732_v50 = vld [vmem:[%s3878_s4 + $0xb8] sm:$0xff]   ;;  %v2727_v57 = vld [vmem:[%s3878_s4 + $0x60] sm:$0xff]   ;;  %v2740_v59 = vld [vmem:[%s3878_s4 + $0xa8] sm:$0xff]   ;;  %s2898_s30 = smov 8   ;;  %s2899_s7 = smov 28   ;;  %vm485_vm6 = vcmask 719872  }
  0x38   :  { %v2728_v60 = vld [vmem:[%s3878_s4 + $0x20] sm:$0xff]   ;;  %v2729_v62 = vld [vmem:[%s3878_s4 + $0x58] sm:$0xff]   ;;  %v2733_v1 = vld [vmem:[%s3878_s4 + $0x50] sm:$0xff]   ;;  %s2900_s8 = smov 116   ;;  %s2901_s9 = smov 96   ;;  %vm492_vm7 = vcmask 556032  }
  0x39   :  { %v2743_v61 = vld [vmem:[%s3878_s4 + $0xe0] sm:$0xff]   ;;  %v2730_v63 = vld [vmem:[%s3878_s4 + $0x18] sm:$0xff]   ;;  %v2734_v2 = vld [vmem:[%s3878_s4 + $0x10] sm:$0xff]   ;;  %vm499_vm8 = vcmask 392192   ;;  %vm513_vm9 = vcmask 64512   ;;  %vm518_vm10 = vcmask 949248  }
  0x3a   :  { %v2737_v3 = vld [vmem:[%s3878_s4 + $0x48] sm:$0xff]   ;;  %v2741_v6 = vld [vmem:[%s3878_s4 + $0x40] sm:$0xff]   ;;  %vm506_vm11 = vcmask 228352   ;;  %vm525_vm12 = vcmask 785408   ;;  %vm966_vm13 = vcmask 850944  }
  0x3b   :  { %v2738_v5 = vld [vmem:[%s3878_s4 + $0x8] sm:$0xff]   ;;  %v2742_v9 = vld [vmem:[%s3878_s4] sm:$0xff]  }
  0x74   :  { %v184_v18 = vpop.permute.xlu0 %183  ;;  %v180_v19 = vpop.permute.xlu1 %179 }
  0x75   :  { %v3019_v26 = vsel %vm191_vm1, %v3882_v20, %v184_v18  ;;  %v3024_v27 = vsel %vm191_vm1, %v3884_v21, %v180_v19 }
  0x78   :  { %v186_v24 = vpop.permute.xlu0 %185  ;;  %v182_v25 = vpop.permute.xlu1 %181 }
  0x79   :  { %v3029_v28 = vsel %vm191_vm1, %v3881_v22, %v186_v24  ;;  %v3034_v29 = vsel %vm191_vm1, %v3883_v23, %v182_v25 }
  0x7a   :  { %v197_v30 = vpack.c.bf16 %v3029_v28, %v3019_v26  ;;  %v196_v31 = vpack.c.bf16 %v3034_v29, %v3024_v27 }
  0x7c   :  { %2601 = vmatprep.subr.bf16.mxu0 %v197_v30  ;;  %2609 = vmatprep.subr.bf16.mxu1 %v197_v30 }
  0x7d   :  { %2602 = vmatpush3.bf16.msra.mxu0 %v197_v30  ;;  %2610 = vmatpush3.bf16.msra.mxu1 %v197_v30 }
  0x7e   :  { %2603 = vmatprep.subr.bf16.mxu0 %v196_v31  ;;  %2611 = vmatprep.subr.bf16.mxu1 %v196_v31 }
  0x81   :  { %2604 = vmatpush3.bf16.msra.mxu0 %v196_v31  ;;  %2612 = vmatpush3.bf16.msra.mxu1 %v196_v31 }
  0x82   :  { %2407 = vmatprep.subr.bf16.mxu0 %v2721_v45  ;;  %2435 = vmatprep.subr.bf16.mxu1 %v2731_v49 }
  0x84   :  { %2606 = vmatmul.mubr.msk.bf16.vlgmr.msra.gmra.mxu0 %vm212_vm0, %v3043_v32  ;;  %2614 = vmatmul.mubr.msk.bf16.vlgmr.msra.gmra.mxu1 %vm212_vm0, %v3048_v33 }
  0x85   :  { %v3112_v44 = vpop.permute.xlu1 %56  ;;  %2408 = vmatpush3.bf16.msra.mxu0 %v2722_v46  ;;  %2436 = vmatpush3.bf16.msra.mxu1 %v2732_v50  ;;  %v2744_v46 = vld [vmem:[%s3878_s4 + $0xa0] sm:$0xff]  }
  0x86   :  { %2409 = vmatprep.subr.bf16.mxu0 %v2723_v47  ;;  %2437 = vmatprep.subr.bf16.mxu1 %v2735_v53  ;;  %v2745_v47 = vld [vmem:[%s3878_s4 + $0x178] sm:$0xff]  }
  0x89   :  { %2410 = vmatpush3.bf16.msra.mxu0 %v2724_v48  ;;  %2438 = vmatpush3.bf16.msra.mxu1 %v2736_v54  ;;  %v2747_v48 = vld [vmem:[%s3878_s4 + $0xd8] sm:$0xff]  }
  0x8a   :  { %v3133_v51 = vpop.permute.xlu1 %68  ;;  %2411 = vmatprep.subr.bf16.mxu0 %v2725_v52  ;;  %2439 = vmatprep.subr.bf16.mxu1 %v2739_v56  ;;  %v2748_v52 = vld [vmem:[%s3878_s4 + $0x98] sm:$0xff]  }
  0x8d   :  { %2412 = vmatpush3.bf16.msra.mxu0 %v2726_v55  ;;  %2440 = vmatpush3.bf16.msra.mxu1 %v2740_v59  ;;  %v2751_v55 = vld [vmem:[%s3878_s4 + $0xd0] sm:$0xff]  }
  0x8e   :  { %2413 = vmatprep.subr.bf16.mxu0 %v2727_v57  ;;  %2441 = vmatprep.subr.bf16.mxu1 %v2743_v61  ;;  %v2752_v57 = vld [vmem:[%s3878_s4 + $0x90] sm:$0xff]  }
  0x8f   :  { %v3153_v58 = vpop.permute.xlu1 %88 }
  0x91   :  { %2414 = vmatpush3.bf16.msra.mxu0 %v2728_v60  ;;  %2442 = vmatpush3.bf16.msra.mxu1 %v2744_v46  ;;  %v2760_v46 = vld [vmem:[%s3878_s4 + $0x80] sm:$0xff]  }
  0x92   :  { %2415 = vmatprep.subr.bf16.mxu0 %v2729_v62  ;;  %2443 = vmatprep.subr.bf16.mxu1 %v2747_v48 }
  0x94   :  { %v3170_v0 = vpop.permute.xlu1 %100 }
  0x95   :  { %2416 = vmatpush3.bf16.msra.mxu0 %v2730_v63  ;;  %2444 = vmatpush3.bf16.msra.mxu1 %v2748_v52 }
  0x96   :  { %2417 = vmatprep.subr.bf16.mxu0 %v2733_v1  ;;  %2445 = vmatprep.subr.bf16.mxu1 %v2751_v55  ;;  %v2755_v1 = vld [vmem:[%s3878_s4 + $0xc8] sm:$0xff]  }
  0x99   :  { %v3181_v4 = vpop.permute.xlu1 %60  ;;  %2418 = vmatpush3.bf16.msra.mxu0 %v2734_v2  ;;  %2446 = vmatpush3.bf16.msra.mxu1 %v2752_v57 }
  0x9a   :  { %2419 = vmatprep.subr.bf16.mxu0 %v2737_v3  ;;  %2447 = vmatprep.subr.bf16.mxu1 %v2755_v1  ;;  %v3307_v1 = vld [vmem:[%s3878_s4 + $0x1b0] ss:$0 sps:$4 sm:$0xff]  }
  0x9d   :  { %2420 = vmatpush3.bf16.msra.mxu0 %v2738_v5  ;;  %v2756_v5 = vld [vmem:[%s3878_s4 + $0x88] sm:$0xff]  }
  0x9e   :  { %2421 = vmatprep.subr.bf16.mxu0 %v2741_v6  ;;  %2448 = vmatpush3.bf16.msra.mxu1 %v2756_v5 }
  0xa1   :  { %2422 = vmatpush3.bf16.msra.mxu0 %v2742_v9  ;;  %v2759_v9 = vld [vmem:[%s3878_s4 + $0xc0] sm:$0xff]  }
  0xa2   :  { %2463 = vmatprep.subr.bf16.mxu0 %v2745_v47  ;;  %2449 = vmatprep.subr.bf16.mxu1 %v2759_v9 }
  0xa3   :  { %2450 = vmatpush3.bf16.msra.mxu1 %v2760_v46 }
  0xa4   :  { %2669 = vmatprep.subr.msk.bf16.mxu1 %vm971_vm4, %v3307_v1 }
 0x144   :  { %v3055_v35 = vpop.f32.mrf.mxu0  ;;  %v3057_v36 = vpop.f32.mrf.mxu1 }
 0x145   :  { %346 = vrot.lane.b32.xlu1 %v3055_v35, %s2891_s24 }
 0x146   :  { %v3061_v37 = vpop.f32.mrf.mxu0  ;;  %v3063_v38 = vpop.f32.mrf.mxu1 }
 0x147   :  { %358 = vrot.lane.b32.xlu0 %v3063_v38, %s2892_s26 }
 0x148   :  { %v3069_v39 = vpop.f32.mrf.mxu0  ;;  %v3075_v40 = vpop.f32.mrf.mxu1 }
 0x149   :  { %362 = vrot.lane.b32.xlu1 %v3057_v36, %s2892_s26 }
 0x14a   :  { %v3079_v41 = vpop.f32.mrf.mxu0  ;;  %v3084_v42 = vpop.f32.mrf.mxu1 }
 0x14b   :  { %348 = vrot.lane.b32.xlu0 %v3069_v39, %s2891_s24 }
 0x14d   :  { %342 = vrot.lane.b32.xlu1 %v3061_v37, %s2891_s24 }
 0x14f   :  { %364 = vrot.lane.b32.xlu0 %v3075_v40, %s2892_s26 }
 0x151   :  { %344 = vrot.lane.b32.xlu1 %v3079_v41, %s2891_s24 }
 0x153   :  { %148 = vperm.xlu0 %2704, %v2972_v8  }
 0x155   :  { %360 = vrot.lane.b32.xlu1 %v3084_v42, %s2892_s26 }
 0x157   :  { %2705 = vset.pattern.permute.xlu0 %v2887_v11 }
 0x158   :  { %84 = vperm.xlu0 %2705, %v2972_v8  }
 0x159   :  { %136 = vperm.xlu1 %2703, %v2967_v7  }
 0x15c   :  { %96 = vperm.xlu0 %2705, %v2993_v13  }
 0x15d   :  { %2706 = vset.pattern.permute.xlu1 %v2890_v34 }
 0x15e   :  { %152 = vperm.xlu1 %2706, %v2967_v7  }
 0x160   :  { %2708 = vset.pattern.permute.xlu0 %v2888_v14 }
 0x161   :  { %120 = vperm.xlu0 %2708, %v2967_v7  }
 0x162   :  { %2707 = vset.pattern.permute.xlu1 %v2887_v11 }
 0x163   :  { %92 = vperm.xlu1 %2707, %v2985_v12  }
 0x165   :  { %124 = vperm.xlu0 %2708, %v2985_v12  }
 0x167   :  { %2709 = vset.pattern.permute.xlu1 %v2886_v10  ;;  %v3192_v10 = vpop.permute.xlu1 %64 }
 0x168   :  { %108 = vperm.xlu1 %2709, %v2985_v12  }
 0x169   :  { %2712 = vset.pattern.permute.xlu0 %v2889_v15 }
 0x16a   :  { %144 = vperm.xlu0 %2712, %v2993_v13  }
 0x16b   :  { %v3194_v11 = vpop.permute.xlu1 %80 }
 0x16c   :  { %112 = vperm.xlu1 %2709, %v2993_v13  }
 0x16e   :  { %2714 = vset.pattern.permute.xlu0 %v2893_v43 }
 0x16f   :  { %33 = vperm.xlu0 %2714, %v2972_v8  }
 0x170   :  { %2710 = vset.pattern.permute.xlu1 %v2888_v14  ;;  %v3196_v14 = vpop.permute.xlu0 %52 }
 0x171   :  { %128 = vperm.xlu1 %2710, %v2993_v13  }
 0x174   :  { %v3200_v18 = vpop.permute.xlu0 %104 }
 0x175   :  { %2711 = vset.pattern.permute.xlu1 %v2889_v15  ;;  %v3198_v15 = vpop.permute.xlu1 %116 }
 0x176   :  { %140 = vperm.xlu1 %2711, %v2985_v12   ;;  %3905 = vst [vmem:[#allocation5_spill] sm:$0xff] %v3198_v15 }
 0x178   :  { %v3204_v24 = vpop.permute.xlu0 %72 }
 0x179   :  { %v3202_v19 = vpop.permute.xlu1 %132 }
 0x17a   :  { %2713 = vset.pattern.permute.xlu1 %v2890_v34  ;;  %3906 = vst [vmem:[#allocation6_spill] sm:$0xff] %v3202_v19 }
 0x17b   :  { %156 = vperm.xlu1 %2713, %v2985_v12  }
 0x17c   :  { %v3206_v30 = vpop.permute.xlu0 %76 }
 0x17f   :  { %160 = vperm.xlu1 %2713, %v2993_v13  }
 0x183   :  { %2715 = vset.pattern.permute.xlu1 %v2893_v43 }
 0x184   :  { %38 = vperm.xlu1 %2715, %v2967_v7  }
 0x1b7   :  { %v347_v25 = vpop.permute.xlu1 %346 }
 0x1b8   :  { %v373_v48 = vsel %vm370_vm2, %v3019_v26, %v347_v25 }
 0x1b9   :  { %v359_v43 = vpop.permute.xlu0 %358 }
 0x1bb   :  { %v363_v31 = vpop.permute.xlu1 %362 }
 0x1bd   :  { %v349_v53 = vpop.permute.xlu0 %348 }
 0x1bf   :  { %v343_v45 = vpop.permute.xlu1 %342 }
 0x1c0   :  { %v371_v49 = vsel %vm370_vm2, %v3024_v27, %v343_v45 }
 0x1c1   :  { %v3223_v54 = vsel %vm375_vm3, %v371_v49, %v359_v43  ;;  %v365_v63 = vpop.permute.xlu0 %364  ;;  %v374_v43 = vsel %vm370_vm2, %v3029_v28, %v349_v53  ;;  %v3274_v49 = vsel %vm375_vm3, %v373_v48, %v363_v31 }
 0x1c2   :  { %v392_v60 = vmul.f32 %v3223_v54, %v3133_v51  ;;  %v386_v62 = vmul.f32 %v3223_v54, %v3196_v14  ;;  %v3265_v47 = vsel %vm375_vm3, %v374_v43, %v365_v63  ;;  %v404_v28 = vmul.f32 %v3223_v54, %v3170_v0 }
 0x1c3   :  { %v345_v50 = vpop.permute.xlu1 %344  ;;  %v395_v53 = vmul.f32 %v3265_v47, %v3194_v11  ;;  %v394_v31 = vmul.f32 %v3274_v49, %v3206_v30  ;;  %v410_v5 = vmul.f32 %v3223_v54, %v3198_v15 }
 0x1c4   :  { %v372_v56 = vsel %vm370_vm2, %v3034_v29, %v345_v50 }
 0x1c7   :  { %v361_v27 = vpop.permute.xlu1 %360 }
 0x1c8   :  { %v3234_v59 = vsel %vm375_vm3, %v372_v56, %v361_v27  ;;  %v389_v27 = vmul.f32 %v3265_v47, %v3192_v10 }
 0x1c9   :  { %v393_v61 = vmul.f32 %v3234_v59, %v3204_v24  ;;  %v387_v29 = vmul.f32 %v3234_v59, %v3112_v44  ;;  %v405_v45 = vmul.f32 %v3234_v59, %v3200_v18  ;;  %v399_v26 = vmul.f32 %v3234_v59, %v3153_v58 }
 0x1cb   :  { %v396_v2 = vpack.c.bf16 %v393_v61, %v392_v60  ;;  %v390_v3 = vpack.c.bf16 %v387_v29, %v386_v62  ;;  %v408_v52 = vpack.c.bf16 %v405_v45, %v404_v28  ;;  %v397_v61 = vpack.c.bf16 %v395_v53, %v394_v31 }
 0x1cc   :  { %v388_v62 = vmul.f32 %v3274_v49, %v3181_v4  ;;  %v416_v29 = vmul.f32 %v3223_v54, %v3202_v19 }
 0x1cd   :  { %436 = vrot.lane.b32.xlu0 %v396_v2, %s2894_s18  ;;  %430 = vrot.lane.b32.xlu1 %v390_v3, %s2895_s19 }
 0x1ce   :  { %v3252_v6 = vpop.permute.xlu0 %148 }
 0x1cf   :  { %3907 = vst [vmem:[#allocation7_spill] sm:$0xff] %v3252_v6 }
 0x1d1   :  { %48 = vperm.xlu0 %2714, %v2993_v13   ;;  %43 = vperm.xlu1 %2715, %v2985_v12  }
 0x1d3   :  { %v3276_v50 = vpop.permute.xlu0 %84 }
 0x1d4   :  { %v398_v25 = vmul.f32 %v3223_v54, %v3276_v50  ;;  %v3284_v55 = vpop.permute.xlu1 %136 }
 0x1d5   :  { %3908 = vst [vmem:[#allocation8_spill] sm:$0xff] %v3284_v55  ;;  %448 = vrot.lane.b32.xlu0 %v408_v52, %s2896_s23  ;;  %v417_v57 = vmul.f32 %v3234_v59, %v3284_v55  ;;  %v422_v52 = vmul.f32 %v3223_v54, %v3252_v6 }
 0x1d6   :  { %v402_v56 = vpack.c.bf16 %v399_v26, %v398_v25  ;;  %2716 = vset.pattern.permute.xlu0 %v2890_v34  ;;  %v391_v34 = vpack.c.bf16 %v389_v27, %v388_v62 }
 0x1d7   :  { %v3294_v60 = vpop.permute.xlu0 %96  ;;  %v420_v2 = vpack.c.bf16 %v417_v57, %v416_v29 }
 0x1d8   :  { %3909 = vst [vmem:[#allocation9_spill] sm:$0xff] %v3294_v60  ;;  %442 = vrot.lane.b32.xlu1 %v402_v56, %s2897_s27  ;;  %v401_v45 = vmul.f32 %v3265_v47, %v3294_v60 }
 0x1d9   :  { %v3301_v63 = vpop.permute.xlu1 %152  ;;  %438 = vrot.lane.b32.xlu0 %v397_v61, %s2894_s18 }
 0x1da   :  { %3910 = vst [vmem:[#allocation10_spill] sm:$0xff] %v3301_v63  ;;  %v423_v46 = vmul.f32 %v3234_v59, %v3301_v63 }
 0x1dc   :  { %432 = vrot.lane.b32.xlu1 %v391_v34, %s2895_s19  ;;  %v3310_v3 = vpop.permute.xlu0 %120  ;;  %v426_v26 = vpack.c.bf16 %v423_v46, %v422_v52  ;;  %v29_v52 = vpack.c.bf16 %v2967_v7, %v2972_v8  ;;  %v30_v7 = vpack.c.bf16 %v2993_v13, %v2985_v12  ;;  %v2749_v13 = vld [vmem:[%s3878_s4 + $0x170] sm:$0xff]  }
 0x1dd   :  { %3911 = vst [vmem:[#allocation11_spill] sm:$0xff] %v3310_v3  ;;  %v411_v9 = vmul.f32 %v3234_v59, %v3310_v3  ;;  %460 = vrot.lane.b32.xlu0 %v420_v2, %s2898_s30 }
 0x1de   :  { %v3319_v43 = vpop.permute.xlu1 %92 }
 0x1df   :  { %3912 = vst [vmem:[#allocation12_spill] sm:$0xff] %v3319_v43  ;;  %v414_v48 = vpack.c.bf16 %v411_v9, %v410_v5  ;;  %v400_v28 = vmul.f32 %v3274_v49, %v3319_v43 }
 0x1e0   :  { %v3340_v57 = vpop.permute.xlu0 %124 }
 0x1e1   :  { %v403_v53 = vpack.c.bf16 %v401_v45, %v400_v28  ;;  %454 = vrot.lane.b32.xlu1 %v414_v48, %s2899_s7  ;;  %3915 = vst [vmem:[#allocation15_spill] sm:$0xff] %v3340_v57  ;;  %v412_v29 = vmul.f32 %v3274_v49, %v3340_v57 }
 0x1e3   :  { %v3330_v25 = vpop.permute.xlu1 %108  ;;  %444 = vrot.lane.b32.xlu0 %v403_v53, %s2897_s27 }
 0x1e4   :  { %3913 = vst [vmem:[#allocation13_spill] sm:$0xff] %v3330_v25  ;;  %v406_v56 = vmul.f32 %v3274_v49, %v3330_v25 }
 0x1e5   :  { %466 = vrot.lane.b32.xlu1 %v426_v26, %s2900_s8  ;;  %v3349_v2 = vpop.permute.xlu0 %144 }
 0x1e6   :  { %3917 = vst [vmem:[#allocation17_spill] sm:$0xff] %v3349_v2  ;;  %v419_v45 = vmul.f32 %v3265_v47, %v3349_v2 }
 0x1e7   :  { %v3334_v31 = vpop.permute.xlu1 %112 }
 0x1e8   :  { %3914 = vst [vmem:[#allocation14_spill] sm:$0xff] %v3334_v31  ;;  %v407_v27 = vmul.f32 %v3265_v47, %v3334_v31 }
 0x1ea   :  { %v409_v61 = vpack.c.bf16 %v407_v27, %v406_v56  ;;  %v3370_v27 = vpop.permute.xlu0 %33 }
 0x1eb   :  { %v380_v8 = vmul.f32 %v3223_v54, %v3370_v27  ;;  %v2750_v54 = vld [vmem:[%s3878_s4 + $0x130] sm:$0xff]  }
 0x1ec   :  { %v3342_v62 = vpop.permute.xlu1 %128  ;;  %450 = vrot.lane.b32.xlu1 %v409_v61, %s2896_s23 }
 0x1ed   :  { %3916 = vst [vmem:[#allocation16_spill] sm:$0xff] %v3342_v62  ;;  %v413_v34 = vmul.f32 %v3265_v47, %v3342_v62 }
 0x1ef   :  { %v415_v5 = vpack.c.bf16 %v413_v34, %v412_v29 }
 0x1f1   :  { %v3351_v9 = vpop.permute.xlu1 %140  ;;  %456 = vrot.lane.b32.xlu0 %v415_v5, %s2899_s7 }
 0x1f2   :  { %3918 = vst [vmem:[#allocation18_spill] sm:$0xff] %v3351_v9  ;;  %v418_v46 = vmul.f32 %v3274_v49, %v3351_v9 }
 0x1f4   :  { %v421_v48 = vpack.c.bf16 %v419_v45, %v418_v46 }
 0x1f6   :  { %v3358_v28 = vpop.permute.xlu1 %156  ;;  %462 = vrot.lane.b32.xlu1 %v421_v48, %s2898_s30  ;;  %v2746_v48 = vld [vmem:[%s3878_s4 + $0x138] sm:$0xff]  }
 0x1f7   :  { %3919 = vst [vmem:[#allocation19_spill] sm:$0xff] %v3358_v28  ;;  %v424_v26 = vmul.f32 %v3274_v49, %v3358_v28 }
 0x1fa   :  { %v3363_v53 = vpop.permute.xlu1 %160  ;;  %472 = vrot.lane.b32.xlu1 %v29_v52, %s2901_s9 }
 0x1fb   :  { %3920 = vst [vmem:[#allocation20_spill] sm:$0xff] %v3363_v53  ;;  %v425_v56 = vmul.f32 %v3265_v47, %v3363_v53 }
 0x1fd   :  { %v427_v61 = vpack.c.bf16 %v425_v56, %v424_v26  ;;  %v2754_v26 = vld [vmem:[%s3878_s4 + $0x128] sm:$0xff]   ;;  %v2757_v56 = vld [vmem:[%s3878_s4 + $0x160] sm:$0xff]  }
 0x1ff   :  { %v3372_v29 = vpop.permute.xlu1 %38  ;;  %468 = vrot.lane.b32.xlu0 %v427_v61, %s2900_s8  ;;  %v2758_v61 = vld [vmem:[%s3878_s4 + $0x120] sm:$0xff]  }
 0x200   :  { %v381_v34 = vmul.f32 %v3234_v59, %v3372_v29  ;;  %v2753_v59 = vld [vmem:[%s3878_s4 + $0x168] sm:$0xff]  }
 0x202   :  { %v384_v5 = vpack.c.bf16 %v381_v34, %v380_v8  ;;  %v2761_v34 = vld [vmem:[%s3878_s4 + $0x158] sm:$0xff]  }
 0x203   :  { %474 = vrot.lane.b32.xlu0 %v30_v7, %s2901_s9 }
 0x23f   :  { %v431_v45 = vpop.permute.xlu1 %430  ;;  %v437_v46 = vpop.permute.xlu0 %436 }
 0x240   :  { %v479_v52 = vsel %vm476_vm5, %v384_v5, %v431_v45  ;;  %v487_v12 = vsel %vm485_vm6, %v431_v45, %v437_v46 }
 0x241   :  { %1007 = vmatprep.mubr.bf16.mxu0 %v487_v12 }
 0x242   :  { %1008 = vmatmul.mubr.bf16.vlgmr.msra.gmra.mxu0 %v479_v52 }
 0x243   :  { %2464 = vmatpush3.bf16.msra.mxu0 %v2746_v48  ;;  %v2762_v48 = vld [vmem:[%s3878_s4 + $0x118] sm:$0xff]  }
 0x244   :  { %2465 = vmatprep.subr.bf16.mxu0 %v2749_v13  ;;  %v2763_v13 = vld [vmem:[%s3878_s4 + $0x150] sm:$0xff]  }
 0x247   :  { %2466 = vmatpush3.bf16.msra.mxu0 %v2750_v54 }
 0x248   :  { %2467 = vmatprep.subr.bf16.mxu0 %v2753_v59 }
 0x24b   :  { %2468 = vmatpush3.bf16.msra.mxu0 %v2754_v26 }
 0x24c   :  { %v3405_v7 = vpop.permute.xlu1 %43  ;;  %v3407_v8 = vpop.permute.xlu0 %48  ;;  %2469 = vmatprep.subr.bf16.mxu0 %v2757_v56  ;;  %v2764_v56 = vld [vmem:[%s3878_s4 + $0x110] sm:$0xff]  }
 0x24d   :  { %3921 = vst [vmem:[#allocation21_spill] sm:$0xff] %v3405_v7  ;;  %3922 = vst [vmem:[#allocation22_spill] sm:$0xff] %v3407_v8  ;;  %v382_v5 = vmul.f32 %v3274_v49, %v3405_v7  ;;  %v383_v45 = vmul.f32 %v3265_v47, %v3407_v8  ;;  %v973_v49 = vsel %vm971_vm4, %v3307_v1, 0  ;;  %v2770_v47 = vld [vmem:[%s3878_s4 + $0x1a8] sm:$0xff]  }
 0x24f   :  { %2470 = vmatpush3.bf16.msra.mxu0 %v2758_v61  ;;  %v385_v26 = vpack.c.bf16 %v383_v45, %v382_v5  ;;  %v2771_v5 = vld [vmem:[%s3878_s4 + $0x1a0] sm:$0xff]   ;;  %v2766_v45 = vld [vmem:[%s3878_s4 + $0x108] sm:$0xff]  }
 0x250   :  { %v443_v52 = vpop.permute.xlu1 %442  ;;  %v449_v12 = vpop.permute.xlu0 %448  ;;  %2471 = vmatprep.subr.bf16.mxu0 %v2761_v34 }
 0x251   :  { %v494_v54 = vsel %vm492_vm7, %v437_v46, %v443_v52  ;;  %v501_v59 = vsel %vm499_vm8, %v443_v52, %v449_v12  ;;  %v2765_v46 = vld [vmem:[%s3878_s4 + $0x148] sm:$0xff]  }
 0x252   :  { %1056 = vmatprep.mubr.bf16.mxu1 %v501_v59  ;;  %v2772_v59 = vld [vmem:[%s3878_s4 + $0x198] sm:$0xff]  }
 0x253   :  { %2472 = vmatpush3.bf16.msra.mxu0 %v2762_v48  ;;  %1057 = vmatmul.mubr.bf16.vlgmr.msra.gmra.mxu1 %v494_v54 }
 0x254   :  { %v433_v61 = vpop.permute.xlu1 %432  ;;  %v439_v34 = vpop.permute.xlu0 %438  ;;  %2473 = vmatprep.subr.bf16.mxu0 %v2763_v13  ;;  %2618 = vmatpush3.bf16.msra.mxu1 %v973_v49  ;;  %v2768_v13 = vld [vmem:[%s3878_s4 + $0x140] sm:$0xff]  }
 0x255   :  { %v490_v1 = vsel %vm485_vm6, %v433_v61, %v439_v34  ;;  %v483_v52 = vsel %vm476_vm5, %v385_v26, %v433_v61  ;;  %2619 = vmatprep.subr.bf16.mxu1 %v2770_v47  ;;  %v2769_v49 = vld [vmem:[%s3878_s4 + $0x100] sm:$0xff]  }
 0x256   :  { %1015 = vmatprep.mubr.bf16.mxu0 %v490_v1 }
 0x257   :  { %2474 = vmatpush3.bf16.msra.mxu0 %v2764_v56 }
 0x258   :  { %1016 = vmatmul.mubr.bf16.gmra.mxu0 %v483_v52  ;;  %v455_v48 = vpop.permute.xlu1 %454  ;;  %2475 = vmatprep.subr.bf16.mxu0 %v2765_v46  ;;  %v461_v54 = vpop.permute.xlu0 %460  ;;  %v2773_v46 = vld [vmem:[%s3878_s4 + $0x190] sm:$0xff]  }
 0x259   :  { %2620 = vmatpush3.bf16.msra.mxu1 %v2770_v47  ;;  %v515_v26 = vsel %vm513_vm9, %v455_v48, %v461_v54  ;;  %v508_v52 = vsel %vm506_vm11, %v449_v12, %v455_v48  ;;  %v2775_v54 = vld [vmem:[%s3878_s4 + $0x180] sm:$0xff]  }
 0x25a   :  { %2621 = vmatprep.subr.bf16.mxu1 %v2771_v5 }
 0x25b   :  { %2476 = vmatpush3.bf16.msra.mxu0 %v2766_v45 }
 0x25c   :  { %v467_v56 = vpop.permute.xlu1 %466  ;;  %2477 = vmatprep.subr.bf16.mxu0 %v2768_v13  ;;  %v445_v47 = vpop.permute.xlu0 %444 }
 0x25d   :  { %v520_v61 = vsel %vm518_vm10, %v515_v26, %v467_v56  ;;  %2622 = vmatpush3.bf16.msra.mxu1 %v2771_v5  ;;  %v497_v13 = vsel %vm492_vm7, %v439_v34, %v445_v47  ;;  %v2774_v5 = vld [vmem:[%s3878_s4 + $0x188] sm:$0xff]  }
 0x25e   :  { %1105 = vmatprep.mubr.bf16.mxu0 %v520_v61  ;;  %2623 = vmatprep.subr.bf16.mxu1 %v2772_v59 }
 0x25f   :  { %2478 = vmatpush3.bf16.msra.mxu0 %v2769_v49 }
 0x260   :  { %v451_v1 = vpop.permute.xlu1 %450 }
 0x261   :  { %v504_v45 = vsel %vm499_vm8, %v445_v47, %v451_v1  ;;  %2624 = vmatpush3.bf16.msra.mxu1 %v2772_v59 }
 0x262   :  { %1106 = vmatmul.mubr.bf16.vlgmr.msra.gmra.mxu0 %v508_v52  ;;  %1064 = vmatprep.mubr.bf16.mxu1 %v504_v45 }
 0x263   :  { %1065 = vmatmul.mubr.bf16.gmra.mxu1 %v497_v13  ;;  %2625 = vmatprep.subr.bf16.mxu1 %v2773_v46  ;;  %v457_v34 = vpop.permute.xlu0 %456 }
 0x264   :  { %v511_v47 = vsel %vm506_vm11, %v451_v1, %v457_v34 }
 0x265   :  { %2626 = vmatpush3.bf16.msra.mxu1 %v2773_v46 }
 0x266   :  { %2627 = vmatprep.subr.bf16.mxu1 %v2774_v5 }
 0x268   :  { %v463_v12 = vpop.permute.xlu1 %462 }
 0x269   :  { %2628 = vmatpush3.bf16.msra.mxu1 %v2774_v5  ;;  %v517_v49 = vsel %vm513_vm9, %v457_v34, %v463_v12 }
 0x26a   :  { %2629 = vmatprep.subr.bf16.mxu1 %v2775_v54 }
 0x26c   :  { %v3466_v48 = vpop.permute.xlu1 %472 }
 0x26d   :  { %3923 = vst [vmem:[#allocation23_spill] sm:$0xff] %v3466_v48  ;;  %v527_v59 = vsel %vm525_vm12, %v467_v56, %v3466_v48  ;;  %2630 = vmatpush3.bf16.msra.mxu1 %v2775_v54  ;;  %v2855_v56 = vld [vmem:[%s3875_s1] sm:$0xff]  }
 0x26e   :  { %2631 = vmatprep.mubr.msk.bf16.mxu1 %vm966_vm13, %v527_v59 }
 0x271   :  { %v469_v26 = vpop.permute.xlu0 %468 }
 0x272   :  { %v523_v61 = vsel %vm518_vm10, %v517_v49, %v469_v26 }
 0x273   :  { %1113 = vmatprep.mubr.bf16.mxu0 %v523_v61 }
 0x274   :  { %1114 = vmatmul.mubr.bf16.gmra.mxu0 %v511_v47 }
 0x275   :  { %v3474_v46 = vpop.permute.xlu0 %474 }
 0x276   :  { %3924 = vst [vmem:[#allocation24_spill] sm:$0xff] %v3474_v46  ;;  %v529_v52 = vsel %vm525_vm12, %v469_v26, %v3474_v46 }
 0x277   :  { %2632 = vmatmul.mubr.msk.bf16.vlgmr.msra.gmra.mxu1 %vm966_vm13, %v529_v52 }
 0x278   :  { %2639 = vmatprep.mubr.msk.bf16.mxu1 %vm212_vm0, %v2855_v56 }
 0x302   :  { %v2423_v45 = vpop.f32.mrf.mxu0 }
 0x304   :  { %v2424_v13 = vpop.f32.mrf.mxu0 }
 0x305   :  { %v2425_v28 = vadd.f32 %v2424_v13, %v2423_v45 }
 0x306   :  { %v2426_v5 = vpop.f32.mrf.mxu0 }
 0x308   :  { %v2427_v54 = vpop.f32.mrf.mxu0 }
 0x309   :  { %v2428_v19 = vadd.f32 %v2427_v54, %v2426_v5  ;;  %v3494_v5 = vld [vmem:[%s3877_s3 + $0x10] sm:$0xff] }
 0x313   :  { %v2451_v1 = vpop.f32.mrf.mxu1 }
 0x315   :  { %v2452_v59 = vpop.f32.mrf.mxu1 }
 0x316   :  { %v2453_v48 = vadd.f32 %v2452_v59, %v2451_v1 }
 0x317   :  { %v2454_v61 = vpop.f32.mrf.mxu1 }
 0x318   :  { %v2429_v12 = vpop.f32.mrf.mxu0  ;;  %v1059_v31 = vadd.f32 %v2453_v48, %v2425_v28 }
 0x319   :  { %v2455_v26 = vpop.f32.mrf.mxu1 }
 0x31a   :  { %v2430_v34 = vpop.f32.mrf.mxu0  ;;  %v2456_v62 = vadd.f32 %v2455_v26, %v2454_v61 }
 0x31b   :  { %v2431_v57 = vadd.f32 %v2430_v34, %v2429_v12 }
 0x31c   :  { %v2432_v49 = vpop.f32.mrf.mxu0 }
 0x31e   :  { %v2433_v47 = vpop.f32.mrf.mxu0 }
 0x31f   :  { %v2434_v7 = vadd.f32 %v2433_v47, %v2432_v49  ;;  %v3501_v49 = vld [vmem:[%s3877_s3 + $0x18] sm:$0xff]  ;;  %v3508_v47 = vld [vmem:[%s3877_s3 + $0x8] sm:$0xff] }
 0x322   :  { %v2479_v22 = vpop.f32.mrf.mxu0 }
 0x323   :  { %v2457_v52 = vpop.f32.mrf.mxu1 }
 0x324   :  { %v2480_v20 = vpop.f32.mrf.mxu0 }
 0x325   :  { %v2458_v23 = vpop.f32.mrf.mxu1  ;;  %v2481_v2 = vadd.f32 %v2480_v20, %v2479_v22 }
 0x326   :  { %v2482_v21 = vpop.f32.mrf.mxu0  ;;  %v2459_v9 = vadd.f32 %v2458_v23, %v2457_v52  ;;  %v1062_v23 = vadd.f32 %v2456_v62, %v2428_v19 }
 0x327   :  { %v2460_v46 = vpop.f32.mrf.mxu1  ;;  %v1108_v8 = vadd.f32 %v2481_v2, %v1059_v31 }
 0x328   :  { %v2483_v56 = vpop.f32.mrf.mxu0  ;;  %v1067_v43 = vadd.f32 %v2459_v9, %v2431_v57 }
 0x329   :  { %v2461_v53 = vpop.f32.mrf.mxu1  ;;  %v2484_v3 = vadd.f32 %v2483_v56, %v2482_v21  ;;  %v3515_v56 = vld [vmem:[%s3877_s3] sm:$0xff] }
 0x32a   :  { %v2462_v63 = vadd.f32 %v2461_v53, %v2460_v46 }
 0x32b   :  { %v1111_v34 = vadd.f32 %v2484_v3, %v1062_v23  ;;  %v2860_v23 = vld [vmem:[%s3875_s1 + $0x10] sm:$0xff]  }
 0x32c   :  { %v1070_v22 = vadd.f32 %v2462_v63, %v2434_v7 }
 0x334   :  { %v2485_v25 = vpop.f32.mrf.mxu0 }
 0x336   :  { %v2486_v6 = vpop.f32.mrf.mxu0 }
 0x337   :  { %v2487_v60 = vadd.f32 %v2486_v6, %v2485_v25  ;;  %v2633_v15 = vpop.f32.mrf.mxu1 }
 0x338   :  { %v2488_v55 = vpop.f32.mrf.mxu0 }
 0x339   :  { %v1116_v1 = vadd.f32 %v2487_v60, %v1067_v43  ;;  %v1156_v59 = vpop.f32.mrf.mxu1 }
 0x33a   :  { %v1157_v45 = vadd.f32 %v1156_v59, %v1108_v8  ;;  %v2489_v20 = vpop.f32.mrf.mxu0 }
 0x33b   :  { %v1165_v13 = vadd.f32 %v2633_v15, %v1116_v1  ;;  %v2490_v12 = vadd.f32 %v2489_v20, %v2488_v55  ;;  %v2634_v28 = vpop.f32.mrf.mxu1 }
 0x33c   :  { %v2325_v48 = vmul.f32 -1.442695, %v1157_v45 }
 0x33d   :  { %v2327_v57 = vmul.f32 -1.442695, %v1165_v13  ;;  %v1119_v9 = vadd.f32 %v2490_v12, %v1070_v22  ;;  %v1159_v6 = vpop.f32.mrf.mxu1 }
 0x33e   :  { %2831 = vpow2.f32 %v2325_v48  ;;  %v1160_v25 = vadd.f32 %v1159_v6, %v1111_v34 }
 0x33f   :  { %2833 = vpow2.f32 %v2327_v57  ;;  %v1168_v21 = vadd.f32 %v2634_v28, %v1119_v9 }
 0x340   :  { %v2326_v31 = vmul.f32 -1.442695, %v1160_v25 }
 0x341   :  { %v2328_v2 = vmul.f32 -1.442695, %v1168_v21 }
 0x342   :  { %2835 = vpow2.f32 %v2326_v31 }
 0x343   :  { %2837 = vpow2.f32 %v2328_v2 }
 0x34b   :  { %v2832_v19 = vpop.eup %2831 }
 0x34c   :  { %v2834_v60 = vpop.eup %2833  ;;  %v1183_v43 = vadd.f32 1.0, %v2832_v19 }
 0x34d   :  { %v1185_v63 = vadd.f32 1.0, %v2834_v60 }
 0x34e   :  { %2839 = vrcp.f32 %v1183_v43 }
 0x34f   :  { %v2836_v15 = vpop.eup %2835  ;;  %2841 = vrcp.f32 %v1185_v63  ;;  %v2780_v63 = vld [vmem:[%s3879_s5 + $0xf8] sm:$0xff]  }
 0x350   :  { %v2838_v55 = vpop.eup %2837  ;;  %v1184_v62 = vadd.f32 1.0, %v2836_v15  ;;  %v2784_v15 = vld [vmem:[%s3879_s5 + $0xf0] sm:$0xff]  }
 0x351   :  { %v1186_v3 = vadd.f32 1.0, %v2838_v55  ;;  %v2779_v55 = vld [vmem:[%s3879_s5 + $0x30] sm:$0xff]  }
 0x352   :  { %2843 = vrcp.f32 %v1184_v62  ;;  %v2782_v62 = vld [vmem:[%s3879_s5 + $0x68] sm:$0xff]  }
 0x353   :  { %2845 = vrcp.f32 %v1186_v3  ;;  %v2785_v3 = vld [vmem:[%s3879_s5 + $0xb0] sm:$0xff]  }
 0x35b   :  { %v3483_v53 = vpop.eup %2839 }
 0x35c   :  { %v3485_v7 = vpop.eup %2841  ;;  %v1195_v1 = vmul.f32 %v3515_v56, %v3483_v53 }
 0x35d   :  { %v1197_v54 = vmul.f32 %v3494_v5, %v3485_v7 }
 0x35f   :  { %v3487_v8 = vpop.eup %2843 }
 0x360   :  { %v3489_v46 = vpop.eup %2845  ;;  %v1196_v26 = vmul.f32 %v3508_v47, %v3487_v8 }
 0x361   :  { %v1198_v61 = vmul.f32 %v3501_v49, %v3489_v46 }
 0x362   :  { %v1199_v59 = vpack.c.bf16 %v1196_v26, %v1195_v1 }
 0x363   :  { %v1200_v52 = vpack.c.bf16 %v1198_v61, %v1197_v54 }
 0x365   :  { %2635 = vmatprep.subr.bf16.mxu1 %v1200_v52 }
 0x366   :  { %2636 = vmatpush3.bf16.msra.mxu1 %v1200_v52 }
 0x367   :  { %2637 = vmatprep.subr.bf16.mxu1 %v1199_v59 }
 0x36a   :  { %2638 = vmatpush3.bf16.msra.mxu1 %v1199_v59 }
 0x36b   :  { %2643 = vmatprep.subr.bf16.mxu1 %v1200_v52 }
 0x36d   :  { %2640 = vmatmul.mubr.msk.bf16.vlgmr.msra.gmra.mxu1 %vm212_vm0, %v3043_v32 }
 0x36e   :  { %2644 = vmatpush3.bf16.msra.mxu1 %v1200_v52  ;;  %2647 = vmatprep.mubr.msk.bf16.mxu1 %vm212_vm0, %v2860_v23  ;;  %v2789_v52 = vld [vmem:[%s3879_s5 + $0xa8] sm:$0xff]   ;;  %v2790_v23 = vld [vmem:[%s3879_s5 + $0x58] sm:$0xff]  }
 0x36f   :  { %2645 = vmatprep.subr.bf16.mxu1 %v1199_v59 }
 0x372   :  { %2646 = vmatpush3.bf16.msra.mxu1 %v1199_v59  ;;  %v2787_v59 = vld [vmem:[%s3879_s5 + $0x20] sm:$0xff]  }
 0x373   :  { %2536 = vmatprep.subr.bf16.mxu1 %v2780_v63 }
 0x375   :  { %2648 = vmatmul.mubr.msk.bf16.vlgmr.msra.gmra.mxu1 %vm212_vm0, %v3048_v33 }
 0x42d   :  { %v2641_v45 = vpop.f32.mrf.mxu1 }
 0x42f   :  { %v1255_v20 = vpop.f32.mrf.mxu1 }
 0x430   :  { %1274 = vrot.lane.b32.xlu1 %v1255_v20, %s2883_s25  ;;  %v2796_v20 = vld [vmem:[%s3879_s5 + $0xd8] sm:$0xff]  }
 0x431   :  { %v2642_v22 = vpop.f32.mrf.mxu1 }
 0x433   :  { %v1258_v13 = vpop.f32.mrf.mxu1 }
 0x434   :  { %1276 = vrot.lane.b32.xlu0 %v1258_v13, %s2883_s25  ;;  %v2794_v13 = vld [vmem:[%s3879_s5 + $0x50] sm:$0xff]  }
 0x435   :  { %v2649_v32 = vpop.f32.mrf.mxu1 }
 0x437   :  { %v1324_v12 = vpop.f32.mrf.mxu1 }
 0x438   :  { %1343 = vrot.lane.b32.xlu1 %v1324_v12, %s2883_s25  ;;  %v2800_v12 = vld [vmem:[%s3879_s5 + $0xd0] sm:$0xff]  }
 0x439   :  { %v2650_v28 = vpop.f32.mrf.mxu1 }
 0x43b   :  { %v1327_v48 = vpop.f32.mrf.mxu1 }
 0x43c   :  { %1278 = vrot.lane.b32.xlu1 %v2641_v45, %s2883_s25  ;;  %1345 = vrot.lane.b32.xlu0 %v1327_v48, %s2883_s25  ;;  %v2793_v45 = vld [vmem:[%s3879_s5 + $0xa0] sm:$0xff]   ;;  %v2798_v48 = vld [vmem:[%s3879_s5 + $0x48] sm:$0xff]  }
 0x440   :  { %1347 = vrot.lane.b32.xlu1 %v2649_v32, %s2883_s25  ;;  %1280 = vrot.lane.b32.xlu0 %v2642_v22, %s2883_s25  ;;  %v2791_v22 = vld [vmem:[%s3879_s5 + $0x18] sm:$0xff]  }
 0x441   :  { %v2797_v32 = vld [vmem:[%s3879_s5 + $0x98] sm:$0xff]  }
 0x444   :  { %1205 = vrot.lane.b32.xlu1 %v1195_v1, %s2883_s25  ;;  %1349 = vrot.lane.b32.xlu0 %v2650_v28, %s2883_s25  ;;  %v2792_v1 = vld [vmem:[%s3879_s5 + $0xe0] sm:$0xff]   ;;  %v2795_v28 = vld [vmem:[%s3879_s5 + $0x10] sm:$0xff]  }
 0x448   :  { %1207 = vrot.lane.b32.xlu0 %v1196_v26, %s2883_s25  ;;  %v2786_v26 = vld [vmem:[%s3879_s5 + $0x60] sm:$0xff]  }
 0x4a2   :  { %v1275_v33 = vpop.permute.xlu1 %1274 }
 0x4a3   :  { %v1286_v34 = vsel %vm191_vm1, %v3061_v37, %v1275_v33  ;;  %v2801_v33 = vld [vmem:[%s3879_s5 + $0x90] sm:$0xff]  }
 0x4a4   :  { %1363 = vrot.lane.b32.xlu1 %v1286_v34, %s2891_s24  ;;  %v2804_v34 = vld [vmem:[%s3879_s5 + $0xc8] sm:$0xff]  }
 0x4a6   :  { %v1277_v57 = vpop.permute.xlu0 %1276 }
 0x4a7   :  { %v1287_v9 = vsel %vm191_vm1, %v3079_v41, %v1277_v57  ;;  %v2799_v57 = vld [vmem:[%s3879_s5 + $0x8] sm:$0xff]  }
 0x4a8   :  { %1365 = vrot.lane.b32.xlu0 %v1287_v9, %s2891_s24  ;;  %v2802_v9 = vld [vmem:[%s3879_s5 + $0x40] sm:$0xff]  }
 0x4aa   :  { %v1344_v6 = vpop.permute.xlu1 %1343 }
 0x4ab   :  { %v1355_v25 = vsel %vm191_vm1, %v3063_v38, %v1344_v6  ;;  %v2805_v6 = vld [vmem:[%s3879_s5 + $0x88] sm:$0xff]  }
 0x4ac   :  { %1379 = vrot.lane.b32.xlu1 %v1355_v25, %s2892_s26  ;;  %v2803_v25 = vld [vmem:[%s3879_s5] sm:$0xff]  }
 0x4ae   :  { %v1279_v21 = vpop.permute.xlu1 %1278  ;;  %v1346_v31 = vpop.permute.xlu0 %1345 }
 0x4af   :  { %v1356_v2 = vsel %vm191_vm1, %v3084_v42, %v1346_v31  ;;  %v1288_v41 = vsel %vm191_vm1, %v3055_v35, %v1279_v21  ;;  %v2776_v35 = vld [vmem:[%s3879_s5 + $0x78] sm:$0xff]  }
 0x4b0   :  { %1209 = vrot.lane.b32.xlu1 %v1197_v54, %s2883_s25  ;;  %1381 = vrot.lane.b32.xlu0 %v1356_v2, %s2892_s26  ;;  %v2788_v54 = vld [vmem:[%s3879_s5 + $0xe8] sm:$0xff]  }
 0x4b1   :  { %2508 = vmatprep.subr.bf16.mxu0 %v2776_v35 }
 0x4b2   :  { %v1281_v37 = vpop.permute.xlu0 %1280  ;;  %v1348_v19 = vpop.permute.xlu1 %1347 }
 0x4b3   :  { %v1357_v38 = vsel %vm191_vm1, %v3057_v36, %v1348_v19  ;;  %v1289_v60 = vsel %vm191_vm1, %v3069_v39, %v1281_v37  ;;  %v2777_v36 = vld [vmem:[%s3879_s5 + $0x38] sm:$0xff]   ;;  %v2778_v39 = vld [vmem:[%s3879_s5 + $0x70] sm:$0xff]  }
 0x4b4   :  { %1367 = vrot.lane.b32.xlu1 %v1288_v41, %s2891_s24  ;;  %1211 = vrot.lane.b32.xlu0 %v1198_v61, %s2883_s25  ;;  %v2783_v61 = vld [vmem:[%s3879_s5 + $0x28] sm:$0xff]   ;;  %v2806_v37 = vld [vmem:[%s3879_s5 + $0x178] sm:$0xff]  }
 0x4b5   :  { %2509 = vmatpush3.bf16.msra.mxu0 %v2777_v36  ;;  %v2807_v41 = vld [vmem:[%s3879_s5 + $0xc0] sm:$0xff]   ;;  %v3926_v36 = vunpack.c.h.bf16 %v3010_v17 }
 0x4b6   :  { %v1350_v42 = vpop.permute.xlu0 %1349  ;;  %2510 = vmatprep.subr.bf16.mxu0 %v2778_v39  ;;  %v1206_v21 = vpop.permute.xlu1 %1205 }
 0x4b7   :  { %v1358_v43 = vsel %vm191_vm1, %v3075_v40, %v1350_v42  ;;  %v2781_v40 = vld [vmem:[%s3879_s5 + $0xb8] sm:$0xff]   ;;  %v3925_v42 = vunpack.c.l.bf16 %v3010_v17 }
 0x4b8   :  { %1383 = vrot.lane.b32.xlu1 %v1357_v38, %s2892_s26  ;;  %1369 = vrot.lane.b32.xlu0 %v1289_v60, %s2891_s24  ;;  %v2809_v60 = vld [vmem:[%s3879_s5 + $0x80] sm:$0xff]  }
 0x4b9   :  { %2537 = vmatpush3.bf16.msra.mxu1 %v2781_v40  ;;  %2511 = vmatpush3.bf16.msra.mxu0 %v2779_v55  ;;  %v3673_v40 = vld [vmem:[%s3879_s5 + $0x1b0] ss:$0 sps:$4 sm:$0xff]  }
 0x4ba   :  { %2538 = vmatprep.subr.bf16.mxu1 %v2784_v15  ;;  %2512 = vmatprep.subr.bf16.mxu0 %v2782_v62  ;;  %v1208_v31 = vpop.permute.xlu0 %1207 }
 0x4bb   :  { %v1218_v39 = vsel %vm191_vm1, %v3926_v36, %v1208_v31 }
 0x4bc   :  { %1385 = vrot.lane.b32.xlu0 %v1358_v43, %s2892_s26  ;;  %v1217_v43 = vsel %vm191_vm1, %v3925_v42, %v1206_v21  ;;  %v3929_v21 = vld [vmem:[#allocation21_spill] sm:$0xff] }
 0x4bd   :  { %2539 = vmatpush3.bf16.msra.mxu1 %v2785_v3  ;;  %2513 = vmatpush3.bf16.msra.mxu0 %v2783_v61 }
 0x4be   :  { %2540 = vmatprep.subr.bf16.mxu1 %v2788_v54  ;;  %2514 = vmatprep.subr.bf16.mxu0 %v2786_v26 }
 0x4c1   :  { %2541 = vmatpush3.bf16.msra.mxu1 %v2789_v52  ;;  %2515 = vmatpush3.bf16.msra.mxu0 %v2787_v59 }
 0x4c2   :  { %2542 = vmatprep.subr.bf16.mxu1 %v2792_v1  ;;  %2516 = vmatprep.subr.bf16.mxu0 %v2790_v23 }
 0x4c5   :  { %2543 = vmatpush3.bf16.msra.mxu1 %v2793_v45  ;;  %2517 = vmatpush3.bf16.msra.mxu0 %v2791_v22 }
 0x4c6   :  { %2544 = vmatprep.subr.bf16.mxu1 %v2796_v20  ;;  %2518 = vmatprep.subr.bf16.mxu0 %v2794_v13 }
 0x4c9   :  { %2545 = vmatpush3.bf16.msra.mxu1 %v2797_v32  ;;  %2519 = vmatpush3.bf16.msra.mxu0 %v2795_v28 }
 0x4ca   :  { %2546 = vmatprep.subr.bf16.mxu1 %v2800_v12  ;;  %2520 = vmatprep.subr.bf16.mxu0 %v2798_v48  ;;  %v3927_v12 = vunpack.c.l.bf16 %v3005_v16 }
 0x4cd   :  { %2547 = vmatpush3.bf16.msra.mxu1 %v2801_v33  ;;  %2521 = vmatpush3.bf16.msra.mxu0 %v2799_v57 }
 0x4ce   :  { %2548 = vmatprep.subr.bf16.mxu1 %v2804_v34  ;;  %2522 = vmatprep.subr.bf16.mxu0 %v2802_v9 }
 0x4d1   :  { %2549 = vmatpush3.bf16.msra.mxu1 %v2805_v6  ;;  %2523 = vmatpush3.bf16.msra.mxu0 %v2803_v25 }
 0x4d2   :  { %2564 = vmatprep.subr.bf16.mxu0 %v2806_v37  ;;  %2550 = vmatprep.subr.bf16.mxu1 %v2807_v41 }
 0x4d5   :  { %2551 = vmatpush3.bf16.msra.mxu1 %v2809_v60  ;;  %v3932_v60 = vld [vmem:[#allocation11_spill] sm:$0xff] }
 0x4d6   :  { %2670 = vmatprep.subr.msk.bf16.mxu1 %vm971_vm4, %v3673_v40 }
 0x516   :  { %v1364_v2 = vpop.permute.xlu1 %1363 }
 0x517   :  { %v1391_v35 = vsel %vm370_vm2, %v1217_v43, %v1364_v2 }
 0x51a   :  { %v1366_v19 = vpop.permute.xlu0 %1365 }
 0x51b   :  { %v1392_v15 = vsel %vm370_vm2, %v1218_v39, %v1366_v19  ;;  %v3931_v19 = vld [vmem:[#allocation8_spill] sm:$0xff]  ;;  %v3935_v39 = vld [vmem:[#allocation9_spill] sm:$0xff] }
 0x51e   :  { %v1380_v38 = vpop.permute.xlu1 %1379 }
 0x51f   :  { %v1395_v63 = vsel %vm375_vm3, %v1391_v35, %v1380_v38 }
 0x520   :  { %v1411_v17 = vmul.f32 %v1395_v63, %v3133_v51  ;;  %v1405_v61 = vmul.f32 %v1395_v63, %v3196_v14  ;;  %v3684_v52 = vmul.f32 %v1395_v63, %v3370_v27  ;;  %v1417_v14 = vmul.f32 %v1395_v63, %v3276_v50 }
 0x522   :  { %v1210_v55 = vpop.permute.xlu1 %1209  ;;  %v1382_v62 = vpop.permute.xlu0 %1381 }
 0x523   :  { %v1396_v3 = vsel %vm375_vm3, %v1392_v15, %v1382_v62 }
 0x524   :  { %v1412_v54 = vmul.f32 %v1396_v3, %v3204_v24  ;;  %v1406_v26 = vmul.f32 %v1396_v3, %v3112_v44  ;;  %v3687_v1 = vmul.f32 %v1396_v3, %v3372_v29  ;;  %v1424_v22 = vmul.f32 %v1396_v3, %v3200_v18 }
 0x525   :  { %v1418_v51 = vmul.f32 %v1396_v3, %v3153_v58  ;;  %v1423_v44 = vmul.f32 %v1395_v63, %v3170_v0  ;;  %v1219_v18 = vsel %vm191_vm1, %v3927_v12, %v1210_v55  ;;  %v3928_v0 = vunpack.c.h.bf16 %v3005_v16  ;;  %v3930_v16 = vld [vmem:[#allocation22_spill] sm:$0xff] }
 0x526   :  { %v1368_v59 = vpop.permute.xlu1 %1367  ;;  %v1212_v23 = vpop.permute.xlu0 %1211  ;;  %v1415_v45 = vpack.c.bf16 %v1412_v54, %v1411_v17  ;;  %v1409_v20 = vpack.c.bf16 %v1406_v26, %v1405_v61  ;;  %v1403_v24 = vpack.c.bf16 %v3687_v1, %v3684_v52  ;;  %v1436_v38 = vmul.f32 %v1396_v3, %v3931_v19  ;;  %v3936_v55 = vld [vmem:[#allocation10_spill] sm:$0xff]  ;;  %v3937_v17 = vld [vmem:[#allocation12_spill] sm:$0xff]  ;;  %v3938_v61 = vld [vmem:[#allocation7_spill] sm:$0xff] }
 0x527   :  { %v1427_v13 = vpack.c.bf16 %v1424_v22, %v1423_v44  ;;  %v1421_v32 = vpack.c.bf16 %v1418_v51, %v1417_v14  ;;  %v1393_v58 = vsel %vm370_vm2, %v1219_v18, %v1368_v59  ;;  %v1220_v50 = vsel %vm191_vm1, %v3928_v0, %v1212_v23  ;;  %v3940_v22 = vld [vmem:[#allocation14_spill] sm:$0xff]  ;;  %v3941_v44 = vld [vmem:[#allocation15_spill] sm:$0xff]  ;;  %v3942_v14 = vld [vmem:[#allocation13_spill] sm:$0xff] }
 0x528   :  { %1455 = vrot.lane.b32.xlu0 %v1415_v45, %s2894_s18  ;;  %1449 = vrot.lane.b32.xlu1 %v1409_v20, %s2895_s19  ;;  %v1430_v42 = vmul.f32 %v1396_v3, %v3932_v60  ;;  %v1442_v62 = vmul.f32 %v1396_v3, %v3936_v55  ;;  %v1441_v26 = vmul.f32 %v1395_v63, %v3938_v61  ;;  %v3939_v45 = vld [vmem:[#allocation16_spill] sm:$0xff]  ;;  %v3944_v18 = vld [vmem:[#allocation17_spill] sm:$0xff]  ;;  %v2823_v55 = vld [vmem:[%s3879_s5 + $0x110] sm:$0xff]  }
 0x529   :  { %v2817_v60 = vld [vmem:[%s3879_s5 + $0x120] sm:$0xff]  }
 0x52a   :  { %v1384_v27 = vpop.permute.xlu1 %1383  ;;  %v1370_v29 = vpop.permute.xlu0 %1369  ;;  %v1445_v23 = vpack.c.bf16 %v1442_v62, %v1441_v26  ;;  %v2826_v26 = vld [vmem:[%s3879_s5 + $0x108] sm:$0xff]  }
 0x52b   :  { %v1397_v28 = vsel %vm375_vm3, %v1393_v58, %v1384_v27  ;;  %v1394_v48 = vsel %vm370_vm2, %v1220_v50, %v1370_v29  ;;  %v3945_v58 = vld [vmem:[#allocation19_spill] sm:$0xff]  ;;  %v3946_v50 = vld [vmem:[#allocation18_spill] sm:$0xff] }
 0x52c   :  { %1467 = vrot.lane.b32.xlu0 %v1427_v13, %s2896_s23  ;;  %1461 = vrot.lane.b32.xlu1 %v1421_v32, %s2897_s27  ;;  %v1413_v57 = vmul.f32 %v1397_v28, %v3206_v30  ;;  %v1407_v6 = vmul.f32 %v1397_v28, %v3181_v4  ;;  %v3714_v31 = vmul.f32 %v1397_v28, %v3929_v21  ;;  %v3933_v4 = vld [vmem:[#allocation6_spill] sm:$0xff]  ;;  %v3943_v32 = vld [vmem:[#allocation20_spill] sm:$0xff] }
 0x52d   :  { %v1419_v54 = vmul.f32 %v1397_v28, %v3937_v17  ;;  %v1431_v3 = vmul.f32 %v1397_v28, %v3941_v44  ;;  %v1425_v27 = vmul.f32 %v1397_v28, %v3942_v14  ;;  %v1443_v0 = vmul.f32 %v1397_v28, %v3945_v58  ;;  %v2813_v21 = vld [vmem:[%s3879_s5 + $0x168] sm:$0xff]  }
 0x52e   :  { %v1386_v33 = vpop.permute.xlu0 %1385  ;;  %v2825_v17 = vld [vmem:[%s3879_s5 + $0x148] sm:$0xff]  }
 0x52f   :  { %v1398_v34 = vsel %vm375_vm3, %v1394_v48, %v1386_v33  ;;  %v1437_v48 = vmul.f32 %v1397_v28, %v3946_v50 }
 0x530   :  { %v1414_v9 = vmul.f32 %v1398_v34, %v3194_v11  ;;  %v1408_v25 = vmul.f32 %v1398_v34, %v3192_v10  ;;  %v3717_v2 = vmul.f32 %v1398_v34, %v3930_v16  ;;  %v1435_v10 = vmul.f32 %v1395_v63, %v3933_v4  ;;  %v3934_v11 = vld [vmem:[#allocation5_spill] sm:$0xff]  ;;  %v2815_v16 = vld [vmem:[%s3879_s5 + $0x1a8] sm:$0xff]  }
 0x531   :  { %v1429_v43 = vmul.f32 %v1395_v63, %v3934_v11  ;;  %v1420_v15 = vmul.f32 %v1398_v34, %v3935_v39  ;;  %v1432_v20 = vmul.f32 %v1398_v34, %v3939_v45  ;;  %v1426_v51 = vmul.f32 %v1398_v34, %v3940_v22  ;;  %v2821_v11 = vld [vmem:[%s3879_s5 + $0x198] sm:$0xff]   ;;  %v2828_v45 = vld [vmem:[%s3879_s5 + $0x140] sm:$0xff]  }
 0x532   :  { %v1416_v37 = vpack.c.bf16 %v1414_v9, %v1413_v57  ;;  %v1410_v41 = vpack.c.bf16 %v1408_v25, %v1407_v6  ;;  %v1404_v30 = vpack.c.bf16 %v3717_v2, %v3714_v31  ;;  %v1439_v35 = vpack.c.bf16 %v1436_v38, %v1435_v10  ;;  %v2808_v9 = vld [vmem:[%s3879_s5 + $0x138] sm:$0xff]   ;;  %v2811_v25 = vld [vmem:[%s3879_s5 + $0x130] sm:$0xff]   ;;  %v2830_v22 = vld [vmem:[%s3879_s5 + $0x180] sm:$0xff]  }
 0x533   :  { %v1433_v36 = vpack.c.bf16 %v1430_v42, %v1429_v43  ;;  %v1422_v59 = vpack.c.bf16 %v1420_v15, %v1419_v54  ;;  %v1434_v29 = vpack.c.bf16 %v1432_v20, %v1431_v3  ;;  %v1428_v13 = vpack.c.bf16 %v1426_v51, %v1425_v27  ;;  %v2819_v10 = vld [vmem:[%s3879_s5 + $0x158] sm:$0xff]   ;;  %v2822_v2 = vld [vmem:[%s3879_s5 + $0x150] sm:$0xff]   ;;  %v2827_v54 = vld [vmem:[%s3879_s5 + $0x188] sm:$0xff]  }
 0x534   :  { %1457 = vrot.lane.b32.xlu0 %v1416_v37, %s2894_s18  ;;  %1451 = vrot.lane.b32.xlu1 %v1410_v41, %s2895_s19  ;;  %v1444_v12 = vmul.f32 %v1398_v34, %v3943_v32  ;;  %v1438_v63 = vmul.f32 %v1398_v34, %v3944_v18  ;;  %s2902_s18 = smov 32   ;;  %v2814_v37 = vld [vmem:[%s3879_s5 + $0x128] sm:$0xff]   ;;  %v2818_v41 = vld [vmem:[%s3879_s5 + $0x1a0] sm:$0xff]   ;;  %v3947_v51 = vld [vmem:[#allocation23_spill] sm:$0xff] }
 0x535   :  { %v2820_v31 = vld [vmem:[%s3879_s5 + $0x118] sm:$0xff]   ;;  %v2829_v3 = vld [vmem:[%s3879_s5 + $0x100] sm:$0xff]  }
 0x536   :  { %v1446_v33 = vpack.c.bf16 %v1444_v12, %v1443_v0  ;;  %v1440_v57 = vpack.c.bf16 %v1438_v63, %v1437_v48  ;;  %v3948_v32 = vld [vmem:[#allocation24_spill] sm:$0xff] }
 0x538   :  { %1479 = vrot.lane.b32.xlu0 %v1439_v35, %s2898_s30  ;;  %1473 = vrot.lane.b32.xlu1 %v1433_v36, %s2899_s7 }
 0x53c   :  { %1463 = vrot.lane.b32.xlu0 %v1422_v59, %s2897_s27  ;;  %1485 = vrot.lane.b32.xlu1 %v1445_v23, %s2900_s8 }
 0x540   :  { %1475 = vrot.lane.b32.xlu0 %v1434_v29, %s2899_s7  ;;  %1469 = vrot.lane.b32.xlu1 %v1428_v13, %s2896_s23 }
 0x544   :  { %1487 = vrot.lane.b32.xlu0 %v1446_v33, %s2900_s8  ;;  %1481 = vrot.lane.b32.xlu1 %v1440_v57, %s2898_s30 }
 0x548   :  { %2178 = vrot.lane.b32.xlu0 %v3508_v47, %s2902_s18  ;;  %2176 = vrot.lane.b32.xlu1 %v3515_v56, %s2902_s18 }
 0x54c   :  { %2182 = vrot.lane.b32.xlu0 %v3501_v49, %s2902_s18  ;;  %2180 = vrot.lane.b32.xlu1 %v3494_v5, %s2902_s18  ;;  %v2810_v49 = vld [vmem:[%s3879_s5 + $0x170] sm:$0xff]  }
 0x59a   :  { %v1450_v28 = vpop.permute.xlu1 %1449  ;;  %v1456_v34 = vpop.permute.xlu0 %1455 }
 0x59b   :  { %v1491_v47 = vsel %vm476_vm5, %v1403_v24, %v1450_v28  ;;  %v1498_v6 = vsel %vm485_vm6, %v1450_v28, %v1456_v34  ;;  %v1974_v24 = vsel %vm971_vm4, %v3673_v40, 0  ;;  %v2816_v40 = vld [vmem:[%s3879_s5 + $0x160] sm:$0xff]  }
 0x59c   :  { %2008 = vmatprep.mubr.bf16.mxu0 %v1498_v6 }
 0x59d   :  { %2009 = vmatmul.mubr.bf16.vlgmr.msra.gmra.mxu0 %v1491_v47 }
 0x59e   :  { %2565 = vmatpush3.bf16.msra.mxu0 %v2808_v9  ;;  %v1462_v5 = vpop.permute.xlu1 %1461  ;;  %v3766_v56 = vpop.permute.xlu0 %1467 }
 0x59f   :  { %v1504_v52 = vsel %vm492_vm7, %v1456_v34, %v1462_v5  ;;  %v1510_v1 = vsel %vm499_vm8, %v1462_v5, %v3766_v56  ;;  %2566 = vmatprep.subr.bf16.mxu0 %v2810_v49 }
 0x5a0   :  { %2057 = vmatprep.mubr.bf16.mxu1 %v1510_v1 }
 0x5a1   :  { %2058 = vmatmul.mubr.bf16.vlgmr.msra.gmra.mxu1 %v1504_v52 }
 0x5a2   :  { %2567 = vmatpush3.bf16.msra.mxu0 %v2811_v25  ;;  %2652 = vmatpush3.bf16.msra.mxu1 %v1974_v24 }
 0x5a3   :  { %2568 = vmatprep.subr.bf16.mxu0 %v2813_v21  ;;  %2653 = vmatprep.subr.bf16.mxu1 %v2815_v16 }
 0x5a6   :  { %2569 = vmatpush3.bf16.msra.mxu0 %v2814_v37  ;;  %v1452_v19 = vpop.permute.xlu1 %1451  ;;  %2654 = vmatpush3.bf16.msra.mxu1 %v2815_v16  ;;  %v1458_v38 = vpop.permute.xlu0 %1457 }
 0x5a7   :  { %v1501_v42 = vsel %vm485_vm6, %v1452_v19, %v1458_v38  ;;  %2570 = vmatprep.subr.bf16.mxu0 %v2816_v40  ;;  %v1495_v4 = vsel %vm476_vm5, %v1404_v30, %v1452_v19  ;;  %2655 = vmatprep.subr.bf16.mxu1 %v2818_v41  ;;  %v2824_v30 = vld [vmem:[%s3879_s5 + $0x190] sm:$0xff]   ;;  %s2903_s5 = smov [#allocation2]  }
 0x5a8   :  { %2016 = vmatprep.mubr.bf16.mxu0 %v1501_v42 }
 0x5a9   :  { %2017 = vmatmul.mubr.bf16.gmra.mxu0 %v1495_v4 }
 0x5aa   :  { %2571 = vmatpush3.bf16.msra.mxu0 %v2817_v60  ;;  %v1474_v43 = vpop.permute.xlu1 %1473  ;;  %2656 = vmatpush3.bf16.msra.mxu1 %v2818_v41  ;;  %v1480_v35 = vpop.permute.xlu0 %1479 }
 0x5ab   :  { %2572 = vmatprep.subr.bf16.mxu0 %v2819_v10  ;;  %2657 = vmatprep.subr.bf16.mxu1 %v2821_v11  ;;  %v1522_v36 = vsel %vm513_vm9, %v1474_v43, %v1480_v35  ;;  %v1516_v13 = vsel %vm506_vm11, %v3766_v56, %v1474_v43 }
 0x5ae   :  { %2573 = vmatpush3.bf16.msra.mxu0 %v2820_v31  ;;  %v1486_v39 = vpop.permute.xlu1 %1485  ;;  %2658 = vmatpush3.bf16.msra.mxu1 %v2821_v11  ;;  %v1464_v15 = vpop.permute.xlu0 %1463 }
 0x5af   :  { %2574 = vmatprep.subr.bf16.mxu0 %v2822_v2  ;;  %v1526_v62 = vsel %vm518_vm10, %v1522_v36, %v1486_v39  ;;  %2659 = vmatprep.subr.bf16.mxu1 %v2824_v30  ;;  %v1507_v20 = vsel %vm492_vm7, %v1458_v38, %v1464_v15  ;;  %v1531_v44 = vsel %vm525_vm12, %v1486_v39, %v3947_v51 }
 0x5b0   :  { %2106 = vmatprep.mubr.bf16.mxu0 %v1526_v62 }
 0x5b2   :  { %2575 = vmatpush3.bf16.msra.mxu0 %v2823_v55  ;;  %v1470_v61 = vpop.permute.xlu1 %1469  ;;  %2660 = vmatpush3.bf16.msra.mxu1 %v2824_v30  ;;  %v1476_v59 = vpop.permute.xlu0 %1475 }
 0x5b3   :  { %v1513_v23 = vsel %vm499_vm8, %v1464_v15, %v1470_v61  ;;  %2576 = vmatprep.subr.bf16.mxu0 %v2825_v17  ;;  %2661 = vmatprep.subr.bf16.mxu1 %v2827_v54  ;;  %v1519_v63 = vsel %vm506_vm11, %v1470_v61, %v1476_v59 }
 0x5b4   :  { %2065 = vmatprep.mubr.bf16.mxu1 %v1513_v23 }
 0x5b5   :  { %2066 = vmatmul.mubr.bf16.gmra.mxu1 %v1507_v20 }
 0x5b6   :  { %2577 = vmatpush3.bf16.msra.mxu0 %v2826_v26  ;;  %2662 = vmatpush3.bf16.msra.mxu1 %v2827_v54  ;;  %v1482_v14 = vpop.permute.xlu1 %1481  ;;  %v1488_v27 = vpop.permute.xlu0 %1487 }
 0x5b7   :  { %2665 = vmatprep.mubr.msk.bf16.mxu1 %vm966_vm13, %v1531_v44  ;;  %2578 = vmatprep.subr.bf16.mxu0 %v2828_v45  ;;  %v1524_v29 = vsel %vm513_vm9, %v1476_v59, %v1482_v14  ;;  %v1532_v12 = vsel %vm525_vm12, %v1488_v27, %v3948_v32 }
 0x5b8   :  { %2663 = vmatprep.subr.bf16.mxu1 %v2830_v22  ;;  %v1529_v18 = vsel %vm518_vm10, %v1524_v29, %v1488_v27 }
 0x5ba   :  { %2579 = vmatpush3.bf16.msra.mxu0 %v2829_v3  ;;  %2664 = vmatpush3.bf16.msra.mxu1 %v2830_v22  ;;  %v2177_v32 = vpop.permute.xlu1 %2176 }
 0x5bd   :  { %2107 = vmatmul.mubr.bf16.vlgmr.msra.gmra.mxu0 %v1516_v13  ;;  %2666 = vmatmul.mubr.msk.bf16.vlgmr.msra.gmra.mxu1 %vm966_vm13, %v1532_v12  ;;  %v2179_v12 = vpop.permute.xlu0 %2178 }
 0x5be   :  { %2114 = vmatprep.mubr.bf16.mxu0 %v1529_v18  ;;  %v2181_v18 = vpop.permute.xlu1 %2180 }
 0x5c5   :  { %2115 = vmatmul.mubr.bf16.gmra.mxu0 %v1519_v63  ;;  %v2192_v63 = vsub.f32 1.0, %v3483_v53 }
 0x65d   :  { %v2524_v58 = vpop.f32.mrf.mxu0 }
 0x65f   :  { %v2525_v0 = vpop.f32.mrf.mxu0 }
 0x660   :  { %v2526_v16 = vadd.f32 %v2525_v0, %v2524_v58  ;;  %v2183_v58 = vpop.permute.xlu0 %2182 }
 0x661   :  { %v2552_v50 = vpop.f32.mrf.mxu1  ;;  %v2527_v48 = vpop.f32.mrf.mxu0 }
 0x663   :  { %v2553_v33 = vpop.f32.mrf.mxu1  ;;  %v2528_v57 = vpop.f32.mrf.mxu0 }
 0x664   :  { %v2554_v1 = vadd.f32 %v2553_v33, %v2552_v50  ;;  %v2529_v42 = vadd.f32 %v2528_v57, %v2527_v48  ;;  %v2188_v50 = vmul.f32 %v3483_v53, %v2177_v32  ;;  %v2193_v57 = vsub.f32 1.0, %v3487_v8 }
 0x665   :  { %v2555_v28 = vpop.f32.mrf.mxu1 }
 0x666   :  { %v2060_v41 = vadd.f32 %v2554_v1, %v2526_v16  ;;  %v2191_v1 = vmul.f32 %v3489_v46, %v2183_v58 }
 0x667   :  { %v2556_v9 = vpop.f32.mrf.mxu1 }
 0x668   :  { %v2557_v19 = vadd.f32 %v2556_v9, %v2555_v28 }
 0x669   :  { %v2530_v34 = vpop.f32.mrf.mxu0 }
 0x66a   :  { %v2063_v43 = vadd.f32 %v2557_v19, %v2529_v42 }
 0x66b   :  { %v2531_v47 = vpop.f32.mrf.mxu0 }
 0x66c   :  { %v2532_v36 = vadd.f32 %v2531_v47, %v2530_v34  ;;  %v2189_v34 = vmul.f32 %v3487_v8, %v2179_v12 }
 0x66d   :  { %v2533_v49 = vpop.f32.mrf.mxu0 }
 0x66f   :  { %v2534_v25 = vpop.f32.mrf.mxu0 }
 0x670   :  { %v2535_v59 = vadd.f32 %v2534_v25, %v2533_v49  ;;  %v2195_v25 = vsub.f32 1.0, %v3489_v46 }
 0x675   :  { %v2558_v6 = vpop.f32.mrf.mxu1 }
 0x677   :  { %v2559_v5 = vpop.f32.mrf.mxu1 }
 0x678   :  { %v2560_v35 = vadd.f32 %v2559_v5, %v2558_v6  ;;  %v2194_v6 = vsub.f32 1.0, %v3485_v7  ;;  %v2190_v5 = vmul.f32 %v3485_v7, %v2181_v18 }
 0x679   :  { %v2561_v56 = vpop.f32.mrf.mxu1 }
 0x67a   :  { %v2068_v62 = vadd.f32 %v2560_v35, %v2532_v36 }
 0x67b   :  { %v2562_v52 = vpop.f32.mrf.mxu1 }
 0x67c   :  { %v2563_v17 = vadd.f32 %v2562_v52, %v2561_v56 }
 0x67d   :  { %v2580_v24 = vpop.f32.mrf.mxu0  ;;  %v2667_v21 = vpop.f32.mrf.mxu1 }
 0x67e   :  { %v2071_v20 = vadd.f32 %v2563_v17, %v2535_v59 }
 0x67f   :  { %v2581_v37 = vpop.f32.mrf.mxu0  ;;  %v2157_v40 = vpop.f32.mrf.mxu1 }
 0x680   :  { %v2582_v38 = vadd.f32 %v2581_v37, %v2580_v24 }
 0x681   :  { %v2583_v60 = vpop.f32.mrf.mxu0  ;;  %v2668_v10 = vpop.f32.mrf.mxu1 }
 0x682   :  { %v2109_v4 = vadd.f32 %v2582_v38, %v2060_v41 }
 0x683   :  { %v2584_v11 = vpop.f32.mrf.mxu0  ;;  %v2160_v15 = vpop.f32.mrf.mxu1 }
 0x684   :  { %v2158_v31 = vadd.f32 %v2157_v40, %v2109_v4  ;;  %v2585_v2 = vadd.f32 %v2584_v11, %v2583_v60 }
 0x685   :  { %v2586_v30 = vpop.f32.mrf.mxu0 }
 0x686   :  { %2847 = vtanh.f32 %v2158_v31  ;;  %v2112_v39 = vadd.f32 %v2585_v2, %v2063_v43 }
 0x687   :  { %v2587_v55 = vpop.f32.mrf.mxu0 }
 0x688   :  { %v2161_v54 = vadd.f32 %v2160_v15, %v2112_v39  ;;  %v2588_v61 = vadd.f32 %v2587_v55, %v2586_v30 }
 0x689   :  { %v2589_v26 = vpop.f32.mrf.mxu0 }
 0x68a   :  { %2849 = vtanh.f32 %v2161_v54  ;;  %v2117_v23 = vadd.f32 %v2588_v61, %v2068_v62 }
 0x68b   :  { %v2590_v45 = vpop.f32.mrf.mxu0 }
 0x68c   :  { %v2166_v22 = vadd.f32 %v2667_v21, %v2117_v23  ;;  %v2591_v51 = vadd.f32 %v2590_v45, %v2589_v26 }
 0x68e   :  { %2851 = vtanh.f32 %v2166_v22  ;;  %v2120_v44 = vadd.f32 %v2591_v51, %v2071_v20 }
 0x690   :  { %v2169_v3 = vadd.f32 %v2668_v10, %v2120_v44 }
 0x692   :  { %2853 = vtanh.f32 %v2169_v3 }
 0x693   :  { %v2848_v14 = vpop.eup %2847 }
 0x694   :  { %2200 = vrot.lane.b32.xlu1 %v2848_v14, %s2902_s18 }
 0x697   :  { %v2850_v27 = vpop.eup %2849 }
 0x698   :  { %2202 = vrot.lane.b32.xlu0 %v2850_v27, %s2902_s18 }
 0x69b   :  { %v2852_v29 = vpop.eup %2851 }
 0x69c   :  { %2204 = vrot.lane.b32.xlu1 %v2852_v29, %s2902_s18 }
 0x69f   :  { %v2854_v13 = vpop.eup %2853 }
 0x6a0   :  { %2206 = vrot.lane.b32.xlu0 %v2854_v13, %s2902_s18  ;;  %s2245_s18 = sshll.u32 %s2903_s5, 4  ;;  %s2246_s18 = int_to_ptr.vmem [resolvable:$true] %s2245_s18 }
 0x6a1   :  { %s2861_s13 = scalar_lea.vmem %s2246_s18, 512  ;;  %p2866_p1 = scmp.lt.s32.totalorder %s2246_s18, %s2246_s18 }
 0x6a2   :  { %p2862_p0 = scmp.ne.s32.totalorder %s2246_s18, %s2861_s13  ;;  %p2867_p2 = scmp.lt.s32.totalorder %s2861_s13, %s2861_s13 }
 0x6a4   :  { %p2868_p3 = por %p2867_p2, %p2866_p1 }
 0x6a6   :  { %p2869_p4 = pnand %p2868_p3, %p2862_p0 }
 0x706   :  { %v2201_v0 = vpop.permute.xlu1 %2200 }
 0x707   :  { %v2212_v48 = vmul.f32 %v2201_v0, %v2192_v63 }
 0x709   :  { %v2216_v33 = vadd.f32 %v2212_v48, %v2188_v50 }
 0x70a   :  { %v2203_v28 = vpop.permute.xlu0 %2202 }
 0x70b   :  { %v2213_v9 = vmul.f32 %v2203_v28, %v2193_v57  ;;  %2224 = vrot.lane.b32.xlu1 %v2216_v33, %s2901_s9 }
 0x70d   :  { %v2217_v47 = vadd.f32 %v2213_v9, %v2189_v34 }
 0x70e   :  { %v2205_v49 = vpop.permute.xlu1 %2204 }
 0x70f   :  { %v2214_v56 = vmul.f32 %v2205_v49, %v2194_v6  ;;  %2226 = vrot.lane.b32.xlu0 %v2217_v47, %s2901_s9 }
 0x711   :  { %v2218_v53 = vadd.f32 %v2214_v56, %v2190_v5 }
 0x712   :  { %v2207_v52 = vpop.permute.xlu0 %2206 }
 0x713   :  { %v2215_v24 = vmul.f32 %v2207_v52, %v2195_v25  ;;  %2228 = vrot.lane.b32.xlu1 %v2218_v53, %s2901_s9 }
 0x715   :  { %v2219_v8 = vadd.f32 %v2215_v24, %v2191_v1 }
 0x717   :  { %2230 = vrot.lane.b32.xlu0 %v2219_v8, %s2901_s9 }
 0x77d   :  { %v2225_v21 = vpop.permute.xlu1 %2224 }
 0x77e   :  { %2236 = vst.msk [vmem:[#allocation2] sm:$0xff] %vm212_vm0, %v2225_v21 }
 0x781   :  { %v2227_v16 = vpop.permute.xlu0 %2226 }
 0x782   :  { %2237 = vst.msk [vmem:[#allocation2 + $0x8] sm:$0xff] %vm212_vm0, %v2227_v16 }
 0x785   :  { %v2229_v7 = vpop.permute.xlu1 %2228 }
 0x786   :  { %2238 = vst.msk [vmem:[#allocation2 + $0x10] sm:$0xff] %vm212_vm0, %v2229_v7 }
 0x789   :  { %v2231_v37 = vpop.permute.xlu0 %2230 }
 0x78a   :  { %2239 = vst.msk [vmem:[#allocation2 + $0x18] sm:$0xff] %vm212_vm0, %v2231_v37 }
 0x78b   :  { %2872 = shalt.err (!%p2869_p4)
}
 0x78c   :  { %s2904_s9 = smov 128  }
 0x78d   :  { %2251 = dma.vmem_to_hbm [thread:$0]  %s2246_s18, 512, %s3880_s6, [#allocation3], %s2904_s9, %s2904_s9, %s2898_s30  }
 0x78e   :  { %2881 = dma.done.wait [#allocation3], 512  }
 0x78f   :  { %2882 = vsyncadd [#allocation3], 4294966784 }
 0x790   :  { %2255 = vsyncpa [#allocation3], 1 }

</bundles_post_ra>
